<compile_context>
chip_gen: v5e
topology: v5e:2x2
jax: 0.10.0
libtpu: 0.0.40
codegen_flags: <defaults>
</compile_context>

<pallas_src>
import jax
import jax.numpy as jnp
from jax import lax
from jax.experimental import pallas as pl
from jax.experimental.pallas import tpu as pltpu


# ----------------------------------------------------------------------------
# Fused forward kernel (built as a closure over the static model dimensions).
# ----------------------------------------------------------------------------
def _make_fused_kernel(L, T, B, H, E, Vin, V):
    TB = T * B

    def kernel(*refs):
        it = iter(refs)
        hist_ref = next(it)                        # (T*B, 1) int32, time-major (t, b)
        emb_ref = next(it)                         # (Vin, E)
        h0_ref = next(it)                          # (L, B, H)
        c0_ref = next(it)                          # (L, B, H)
        wih_refs = [next(it) for _ in range(L)]    # (Din_l, 4H), gate cols (i,f,o,g)
        whh_refs = [next(it) for _ in range(L)]    # (H, 4H)
        b_refs = [next(it) for _ in range(L)]      # (1, 4H)
        out_w_ref = next(it)                       # (H, V)
        out_b_ref = next(it)                       # (1, V)
        lp_ref = next(it)                          # (B, T*V)  lane-dense output
        hN_ref = next(it)                          # (L, B, H)
        cN_ref = next(it)                          # (L, B, H)

        # ---- Embedding lookup as a one-hot matmul (exact in fp32, vocab tiny) ----
        hist = hist_ref[...]                                          # (TB, 1) int32
        vocab_iota = lax.broadcasted_iota(jnp.int32, (TB, Vin), 1)
        onehot = (hist == vocab_iota).astype(jnp.float32)             # (TB, Vin)
        x = jnp.dot(onehot, emb_ref[...],
                    preferred_element_type=jnp.float32)               # (TB, E) time-major

        # ---- Stacked LSTM layers, everything resident in VMEM/vregs ----
        for l in range(L):
            wih = wih_refs[l][...]
            whh = whh_refs[l][...]
            bias = b_refs[l][...]

            # Hoisted input projection for the whole sequence (off the serial path).
            gx = jnp.dot(x, wih, preferred_element_type=jnp.float32) + bias  # (TB, 4H)

            h = h0_ref[l]                                             # (B, H)
            c = c0_ref[l]                                             # (B, H)
            hs = []
            for t in range(T):                    # statically unrolled recurrence
                gates = gx[t * B:(t + 1) * B, :] + jnp.dot(
                    h, whh, preferred_element_type=jnp.float32)       # (B, 4H)
                sig = jax.nn.sigmoid(gates[:, 0:3 * H])               # i, f, o (contig.)
                g_g = jnp.tanh(gates[:, 3 * H:4 * H])                 # g
                i_g = sig[:, 0:H]
                f_g = sig[:, H:2 * H]
                o_g = sig[:, 2 * H:3 * H]
                c = f_g * c + i_g * g_g
                h = o_g * jnp.tanh(c)
                hs.append(h)

            hN_ref[l] = h
            cN_ref[l] = c
            x = jnp.concatenate(hs, axis=0)                           # (TB, H) time-major

        # ---- Output projection + log-softmax over the vocab axis ----
        logits = jnp.dot(x, out_w_ref[...],
                         preferred_element_type=jnp.float32) + out_b_ref[...]  # (TB, V)
        m = jnp.max(logits, axis=-1, keepdims=True)
        shifted = logits - m
        lse = jnp.log(jnp.sum(jnp.exp(shifted), axis=-1, keepdims=True))
        lp = shifted - lse                                            # (TB, V)
        # Repack time-major rows into one lane-dense (B, T*V) slab -> single dense store.
        lp_ref[...] = jnp.concatenate(
            [lp[t * B:(t + 1) * B, :] for t in range(T)], axis=1)

    return kernel


# ----------------------------------------------------------------------------
# NameGenerator forward (wrapper == the PyTorch module's forward).
# ----------------------------------------------------------------------------
def name_generator_forward(params, history, prev_hidden_state):
    """history: (B, T) int, prev_hidden_state: (h0, c0) each (L, B, H).
    Returns (log_probs (B, T, V), (h_n (L, B, H), c_n (L, B, H)))."""
    h0, c0 = prev_hidden_state
    history = history.astype(jnp.int32)
    B, T = history.shape
    L, _, H = h0.shape
    Vin, E = params["embedding"].shape
    V = params["out_w_t"].shape[1]

    # Tiny int reshuffle only (16 int32s); all float-tensor work is in the kernel.
    hist_tm = jnp.transpose(history).reshape(T * B, 1)

    inputs = [hist_tm, params["embedding"].astype(jnp.float32), h0, c0]
    inputs += [p["wih_t"] for p in params["lstm"]]
    inputs += [p["whh_t"] for p in params["lstm"]]
    inputs += [p["b"] for p in params["lstm"]]
    inputs += [params["out_w_t"], params["out_b"]]

    vmem = pl.BlockSpec(memory_space=pltpu.MemorySpace.VMEM)
    out_shapes = (
        jax.ShapeDtypeStruct((B, T * V), jnp.float32),
        jax.ShapeDtypeStruct((L, B, H), jnp.float32),
        jax.ShapeDtypeStruct((L, B, H), jnp.float32),
    )
    lp_flat, h_n, c_n = pl.pallas_call(
        _make_fused_kernel(L, T, B, H, E, Vin, V),
        out_shape=out_shapes,
        in_specs=[vmem] * len(inputs),
        out_specs=(vmem, vmem, vmem),
    )(*inputs)

    log_probs = lp_flat.reshape(B, T, V)          # free view reshape, no transpose
    return log_probs, (h_n, c_n)


# ----------------------------------------------------------------------------
# Deterministic parameter construction (shapes follow nn.Embedding/nn.LSTM/nn.Linear).
# ----------------------------------------------------------------------------
def _reorder_gate_rows(m, H):
    """PyTorch packs LSTM gate rows as (i, f, g, o); reorder to (i, f, o, g) so the
    kernel applies sigmoid to one contiguous 3H slice and tanh to the trailing H."""
    return jnp.concatenate(
        [m[0:H], m[H:2 * H], m[3 * H:4 * H], m[2 * H:3 * H]], axis=0)


def init_params(key, input_vocab_size, n_embedding_dims, n_hidden_dims,
                n_lstm_layers, output_vocab_size):
    keys = jax.random.split(key, 2 + 4 * n_lstm_layers + 2)
    ki = iter(keys)
    scale = 1.0 / jnp.sqrt(n_hidden_dims)
    H = n_hidden_dims

    params = {}
    params["embedding"] = jax.random.normal(
        next(ki), (input_vocab_size, n_embedding_dims), jnp.float32)

    lstm_params = []
    for l in range(n_lstm_layers):
        in_dim = n_embedding_dims if l == 0 else n_hidden_dims
        w_ih = jax.random.uniform(next(ki), (4 * H, in_dim), jnp.float32, -scale, scale)
        w_hh = jax.random.uniform(next(ki), (4 * H, H), jnp.float32, -scale, scale)
        b_ih = jax.random.uniform(next(ki), (4 * H,), jnp.float32, -scale, scale)
        b_hh = jax.random.uniform(next(ki), (4 * H,), jnp.float32, -scale, scale)
        lstm_params.append({
            # Kernel-side copies: gate-reordered (i,f,o,g) and pre-transposed.
            "wih_t": _reorder_gate_rows(w_ih, H).T,            # (in_dim, 4H)
            "whh_t": _reorder_gate_rows(w_hh, H).T,            # (H, 4H)
            "b": _reorder_gate_rows(b_ih + b_hh, H).reshape(1, -1),  # (1, 4H)
            # Raw copies (PyTorch i,f,g,o order) for the pure-JAX reference check.
            "_w_ih": w_ih, "_w_hh": w_hh, "_b_ih": b_ih, "_b_hh": b_hh,
        })
    params["lstm"] = lstm_params

    out_w = jax.random.uniform(next(ki), (output_vocab_size, H),
                               jnp.float32, -scale, scale)
    out_b = jax.random.uniform(next(ki), (output_vocab_size,),
                               jnp.float32, -scale, scale)
    params["out_w_t"] = out_w.T                    # (H, V)
    params["out_b"] = out_b.reshape(1, -1)         # (1, V)
    params["_out_w"] = out_w
    params["_out_b"] = out_b
    return params


# ----------------------------------------------------------------------------
# Pure-JAX reference (for a correctness check against the Pallas path).
# ----------------------------------------------------------------------------
def reference_forward(params, history, prev_hidden_state):
    h0, c0 = prev_hidden_state
    emb = jnp.take(params["embedding"], history.astype(jnp.int32), axis=0)
    x = jnp.transpose(emb, (1, 0, 2)).astype(jnp.float32)      # (T, B, E)
    h_finals, c_finals = [], []
    for l, p in enumerate(params["lstm"]):
        H = p["_w_hh"].shape[1]

        def step(carry, x_t, p=p, H=H):
            h, c = carry
            gates = x_t @ p["_w_ih"].T + p["_b_ih"] + h @ p["_w_hh"].T + p["_b_hh"]
            i_g = jax.nn.sigmoid(gates[:, 0:H])
            f_g = jax.nn.sigmoid(gates[:, H:2 * H])
            g_g = jnp.tanh(gates[:, 2 * H:3 * H])
            o_g = jax.nn.sigmoid(gates[:, 3 * H:4 * H])
            c = f_g * c + i_g * g_g
            h = o_g * jnp.tanh(c)
            return (h, c), h

        (hT, cT), ys = lax.scan(step, (h0[l], c0[l]), x)
        x = ys
        h_finals.append(hT)
        c_finals.append(cT)
    lstm_out = jnp.transpose(x, (1, 0, 2))                     # (B, T, H)
    logits = lstm_out @ params["_out_w"].T + params["_out_b"]
    return (jax.nn.log_softmax(logits, axis=2),
            (jnp.stack(h_finals), jnp.stack(c_finals)))


if __name__ == "__main__":
    INPUT_VOCAB = 16
    EMB_DIMS = 32
    HIDDEN_DIMS = 32
    LSTM_LAYERS = 2
    OUTPUT_VOCAB = 16
    BATCH = 2
    SEQ = 8

    root = jax.random.PRNGKey(0)
    k_param, k_hist, k_h, k_c = jax.random.split(root, 4)

    params = init_params(k_param, INPUT_VOCAB, EMB_DIMS, HIDDEN_DIMS,
                         LSTM_LAYERS, OUTPUT_VOCAB)

    history = jax.random.randint(k_hist, (BATCH, SEQ), 0, INPUT_VOCAB,
                                 dtype=jnp.int32)
    h0 = jax.random.normal(k_h, (LSTM_LAYERS, BATCH, HIDDEN_DIMS), jnp.float32)
    c0 = jax.random.normal(k_c, (LSTM_LAYERS, BATCH, HIDDEN_DIMS), jnp.float32)

    fwd = jax.jit(name_generator_forward)
    log_probs, (h_n, c_n) = fwd(params, history, (h0, c0))
    jax.block_until_ready((log_probs, h_n, c_n))

    # Sanity check vs pure-JAX reference.
    ref_lp, (ref_h, ref_c) = reference_forward(params, history, (h0, c0))
    assert log_probs.shape == (BATCH, SEQ, OUTPUT_VOCAB)
    assert h_n.shape == (LSTM_LAYERS, BATCH, HIDDEN_DIMS)
    assert c_n.shape == (LSTM_LAYERS, BATCH, HIDDEN_DIMS)
    assert jnp.allclose(log_probs, ref_lp, atol=1e-4, rtol=1e-4)
    assert jnp.allclose(h_n, ref_h, atol=1e-4, rtol=1e-4)
    assert jnp.allclose(c_n, ref_c, atol=1e-4, rtol=1e-4)
    # Log-softmax rows must exponentiate-sum to 1.
    assert jnp.allclose(jnp.exp(log_probs).sum(-1), 1.0, atol=1e-4)

    print("KERNEL_OK")
</pallas_src>

<mosaic_0001>
module attributes {stable_mosaic.version = 11 : i64} {
  func.func @kernel(%arg0: memref<16x1xi32, #tpu.memory_space<vmem>>, %arg1: memref<16x32xf32, #tpu.memory_space<vmem>>, %arg2: memref<2x2x32xf32, #tpu.memory_space<vmem>>, %arg3: memref<2x2x32xf32, #tpu.memory_space<vmem>>, %arg4: memref<32x128xf32, #tpu.memory_space<vmem>>, %arg5: memref<32x128xf32, #tpu.memory_space<vmem>>, %arg6: memref<32x128xf32, #tpu.memory_space<vmem>>, %arg7: memref<32x128xf32, #tpu.memory_space<vmem>>, %arg8: memref<1x128xf32, #tpu.memory_space<vmem>>, %arg9: memref<1x128xf32, #tpu.memory_space<vmem>>, %arg10: memref<32x16xf32, #tpu.memory_space<vmem>>, %arg11: memref<1x16xf32, #tpu.memory_space<vmem>>, %arg12: memref<2x128xf32, #tpu.memory_space<vmem>>, %arg13: memref<2x2x32xf32, #tpu.memory_space<vmem>>, %arg14: memref<2x2x32xf32, #tpu.memory_space<vmem>>) attributes {dimension_semantics = [], scalar_prefetch = 0 : i64, scratch_operands = 0 : i64, tpu.core_type = #tpu.core_type<tc>} {
    %c0 = arith.constant 0 : index
    %c0_0 = arith.constant 0 : index
    %0 = vector.load %arg0[%c0, %c0_0] : memref<16x1xi32, #tpu.memory_space<vmem>>, vector<16x1xi32>
    %1 = tpu.iota {dimensions = array<i32: 1>} : vector<16x16xi32>
    %2 = vector.broadcast %0 : vector<16x1xi32> to vector<16x16xi32>
    %3 = arith.cmpi eq, %2, %1 : vector<16x16xi32>
    %4 = arith.extui %3 : vector<16x16xi1> to vector<16x16xi32>
    %5 = arith.sitofp %4 : vector<16x16xi32> to vector<16x16xf32>
    %c0_1 = arith.constant 0 : index
    %c0_2 = arith.constant 0 : index
    %6 = vector.load %arg1[%c0_1, %c0_2] : memref<16x32xf32, #tpu.memory_space<vmem>>, vector<16x32xf32>
    %cst = arith.constant dense<0.000000e+00> : vector<16x32xf32>
    %7 = tpu.matmul %5, %6, %cst {dimension_numbers = #tpu.dot_dimension_numbers<[1], [0], [0], [1], [0, 0, 1, 1], [], []>} : vector<16x16xf32>, vector<16x32xf32>, vector<16x32xf32> -> vector<16x32xf32>
    %c0_3 = arith.constant 0 : index
    %c0_4 = arith.constant 0 : index
    %8 = vector.load %arg4[%c0_3, %c0_4] : memref<32x128xf32, #tpu.memory_space<vmem>>, vector<32x128xf32>
    %c0_5 = arith.constant 0 : index
    %c0_6 = arith.constant 0 : index
    %9 = vector.load %arg6[%c0_5, %c0_6] : memref<32x128xf32, #tpu.memory_space<vmem>>, vector<32x128xf32>
    %c0_7 = arith.constant 0 : index
    %c0_8 = arith.constant 0 : index
    %10 = vector.load %arg8[%c0_7, %c0_8] : memref<1x128xf32, #tpu.memory_space<vmem>>, vector<1x128xf32>
    %cst_9 = arith.constant dense<0.000000e+00> : vector<16x128xf32>
    %11 = tpu.matmul %7, %8, %cst_9 {dimension_numbers = #tpu.dot_dimension_numbers<[1], [0], [0], [1], [0, 0, 1, 1], [], []>} : vector<16x32xf32>, vector<32x128xf32>, vector<16x128xf32> -> vector<16x128xf32>
    %12 = vector.broadcast %10 : vector<1x128xf32> to vector<16x128xf32>
    %13 = arith.addf %11, %12 : vector<16x128xf32>
    %c0_10 = arith.constant 0 : index
    %c0_11 = arith.constant 0 : index
    %c0_12 = arith.constant 0 : index
    %14 = vector.load %arg2[%c0_10, %c0_11, %c0_12] : memref<2x2x32xf32, #tpu.memory_space<vmem>>, vector<1x2x32xf32>
    %15 = vector.shape_cast %14 : vector<1x2x32xf32> to vector<2x32xf32>
    %c0_13 = arith.constant 0 : index
    %c0_14 = arith.constant 0 : index
    %c0_15 = arith.constant 0 : index
    %16 = vector.load %arg3[%c0_13, %c0_14, %c0_15] : memref<2x2x32xf32, #tpu.memory_space<vmem>>, vector<1x2x32xf32>
    %17 = vector.shape_cast %16 : vector<1x2x32xf32> to vector<2x32xf32>
    %18 = vector.extract_strided_slice %13 {offsets = [0, 0], sizes = [2, 128], strides = [1, 1]} : vector<16x128xf32> to vector<2x128xf32>
    %cst_16 = arith.constant dense<0.000000e+00> : vector<2x128xf32>
    %19 = tpu.matmul %15, %9, %cst_16 {dimension_numbers = #tpu.dot_dimension_numbers<[1], [0], [0], [1], [0, 0, 1, 1], [], []>} : vector<2x32xf32>, vector<32x128xf32>, vector<2x128xf32> -> vector<2x128xf32>
    %20 = arith.addf %18, %19 : vector<2x128xf32>
    %21 = vector.extract_strided_slice %20 {offsets = [0, 0], sizes = [2, 96], strides = [1, 1]} : vector<2x128xf32> to vector<2x96xf32>
    %22 = arith.negf %21 : vector<2x96xf32>
    %23 = math.exp %22 : vector<2x96xf32>
    %cst_17 = arith.constant 1.000000e+00 : f32
    %24 = vector.broadcast %cst_17 : f32 to vector<2x96xf32>
    %25 = arith.addf %24, %23 : vector<2x96xf32>
    %26 = arith.divf %24, %25 : vector<2x96xf32>
    %27 = vector.extract_strided_slice %20 {offsets = [0, 96], sizes = [2, 32], strides = [1, 1]} : vector<2x128xf32> to vector<2x32xf32>
    %28 = math.tanh %27 : vector<2x32xf32>
    %29 = vector.extract_strided_slice %26 {offsets = [0, 0], sizes = [2, 32], strides = [1, 1]} : vector<2x96xf32> to vector<2x32xf32>
    %30 = vector.extract_strided_slice %26 {offsets = [0, 32], sizes = [2, 32], strides = [1, 1]} : vector<2x96xf32> to vector<2x32xf32>
    %31 = vector.extract_strided_slice %26 {offsets = [0, 64], sizes = [2, 32], strides = [1, 1]} : vector<2x96xf32> to vector<2x32xf32>
    %32 = arith.mulf %30, %17 : vector<2x32xf32>
    %33 = arith.mulf %29, %28 : vector<2x32xf32>
    %34 = arith.addf %32, %33 : vector<2x32xf32>
    %35 = math.tanh %34 : vector<2x32xf32>
    %36 = arith.mulf %31, %35 : vector<2x32xf32>
    %37 = vector.extract_strided_slice %13 {offsets = [2, 0], sizes = [2, 128], strides = [1, 1]} : vector<16x128xf32> to vector<2x128xf32>
    %cst_18 = arith.constant dense<0.000000e+00> : vector<2x128xf32>
    %38 = tpu.matmul %36, %9, %cst_18 {dimension_numbers = #tpu.dot_dimension_numbers<[1], [0], [0], [1], [0, 0, 1, 1], [], []>} : vector<2x32xf32>, vector<32x128xf32>, vector<2x128xf32> -> vector<2x128xf32>
    %39 = arith.addf %37, %38 : vector<2x128xf32>
    %40 = vector.extract_strided_slice %39 {offsets = [0, 0], sizes = [2, 96], strides = [1, 1]} : vector<2x128xf32> to vector<2x96xf32>
    %41 = arith.negf %40 : vector<2x96xf32>
    %42 = math.exp %41 : vector<2x96xf32>
    %cst_19 = arith.constant 1.000000e+00 : f32
    %43 = vector.broadcast %cst_19 : f32 to vector<2x96xf32>
    %44 = arith.addf %43, %42 : vector<2x96xf32>
    %45 = arith.divf %43, %44 : vector<2x96xf32>
    %46 = vector.extract_strided_slice %39 {offsets = [0, 96], sizes = [2, 32], strides = [1, 1]} : vector<2x128xf32> to vector<2x32xf32>
    %47 = math.tanh %46 : vector<2x32xf32>
    %48 = vector.extract_strided_slice %45 {offsets = [0, 0], sizes = [2, 32], strides = [1, 1]} : vector<2x96xf32> to vector<2x32xf32>
    %49 = vector.extract_strided_slice %45 {offsets = [0, 32], sizes = [2, 32], strides = [1, 1]} : vector<2x96xf32> to vector<2x32xf32>
    %50 = vector.extract_strided_slice %45 {offsets = [0, 64], sizes = [2, 32], strides = [1, 1]} : vector<2x96xf32> to vector<2x32xf32>
    %51 = arith.mulf %49, %34 : vector<2x32xf32>
    %52 = arith.mulf %48, %47 : vector<2x32xf32>
    %53 = arith.addf %51, %52 : vector<2x32xf32>
    %54 = math.tanh %53 : vector<2x32xf32>
    %55 = arith.mulf %50, %54 : vector<2x32xf32>
    %56 = vector.extract_strided_slice %13 {offsets = [4, 0], sizes = [2, 128], strides = [1, 1]} : vector<16x128xf32> to vector<2x128xf32>
    %cst_20 = arith.constant dense<0.000000e+00> : vector<2x128xf32>
    %57 = tpu.matmul %55, %9, %cst_20 {dimension_numbers = #tpu.dot_dimension_numbers<[1], [0], [0], [1], [0, 0, 1, 1], [], []>} : vector<2x32xf32>, vector<32x128xf32>, vector<2x128xf32> -> vector<2x128xf32>
    %58 = arith.addf %56, %57 : vector<2x128xf32>
    %59 = vector.extract_strided_slice %58 {offsets = [0, 0], sizes = [2, 96], strides = [1, 1]} : vector<2x128xf32> to vector<2x96xf32>
    %60 = arith.negf %59 : vector<2x96xf32>
    %61 = math.exp %60 : vector<2x96xf32>
    %cst_21 = arith.constant 1.000000e+00 : f32
    %62 = vector.broadcast %cst_21 : f32 to vector<2x96xf32>
    %63 = arith.addf %62, %61 : vector<2x96xf32>
    %64 = arith.divf %62, %63 : vector<2x96xf32>
    %65 = vector.extract_strided_slice %58 {offsets = [0, 96], sizes = [2, 32], strides = [1, 1]} : vector<2x128xf32> to vector<2x32xf32>
    %66 = math.tanh %65 : vector<2x32xf32>
    %67 = vector.extract_strided_slice %64 {offsets = [0, 0], sizes = [2, 32], strides = [1, 1]} : vector<2x96xf32> to vector<2x32xf32>
    %68 = vector.extract_strided_slice %64 {offsets = [0, 32], sizes = [2, 32], strides = [1, 1]} : vector<2x96xf32> to vector<2x32xf32>
    %69 = vector.extract_strided_slice %64 {offsets = [0, 64], sizes = [2, 32], strides = [1, 1]} : vector<2x96xf32> to vector<2x32xf32>
    %70 = arith.mulf %68, %53 : vector<2x32xf32>
    %71 = arith.mulf %67, %66 : vector<2x32xf32>
    %72 = arith.addf %70, %71 : vector<2x32xf32>
    %73 = math.tanh %72 : vector<2x32xf32>
    %74 = arith.mulf %69, %73 : vector<2x32xf32>
    %75 = vector.extract_strided_slice %13 {offsets = [6, 0], sizes = [2, 128], strides = [1, 1]} : vector<16x128xf32> to vector<2x128xf32>
    %cst_22 = arith.constant dense<0.000000e+00> : vector<2x128xf32>
    %76 = tpu.matmul %74, %9, %cst_22 {dimension_numbers = #tpu.dot_dimension_numbers<[1], [0], [0], [1], [0, 0, 1, 1], [], []>} : vector<2x32xf32>, vector<32x128xf32>, vector<2x128xf32> -> vector<2x128xf32>
    %77 = arith.addf %75, %76 : vector<2x128xf32>
    %78 = vector.extract_strided_slice %77 {offsets = [0, 0], sizes = [2, 96], strides = [1, 1]} : vector<2x128xf32> to vector<2x96xf32>
    %79 = arith.negf %78 : vector<2x96xf32>
    %80 = math.exp %79 : vector<2x96xf32>
    %cst_23 = arith.constant 1.000000e+00 : f32
    %81 = vector.broadcast %cst_23 : f32 to vector<2x96xf32>
    %82 = arith.addf %81, %80 : vector<2x96xf32>
    %83 = arith.divf %81, %82 : vector<2x96xf32>
    %84 = vector.extract_strided_slice %77 {offsets = [0, 96], sizes = [2, 32], strides = [1, 1]} : vector<2x128xf32> to vector<2x32xf32>
    %85 = math.tanh %84 : vector<2x32xf32>
    %86 = vector.extract_strided_slice %83 {offsets = [0, 0], sizes = [2, 32], strides = [1, 1]} : vector<2x96xf32> to vector<2x32xf32>
    %87 = vector.extract_strided_slice %83 {offsets = [0, 32], sizes = [2, 32], strides = [1, 1]} : vector<2x96xf32> to vector<2x32xf32>
    %88 = vector.extract_strided_slice %83 {offsets = [0, 64], sizes = [2, 32], strides = [1, 1]} : vector<2x96xf32> to vector<2x32xf32>
    %89 = arith.mulf %87, %72 : vector<2x32xf32>
    %90 = arith.mulf %86, %85 : vector<2x32xf32>
    %91 = arith.addf %89, %90 : vector<2x32xf32>
    %92 = math.tanh %91 : vector<2x32xf32>
    %93 = arith.mulf %88, %92 : vector<2x32xf32>
    %94 = vector.extract_strided_slice %13 {offsets = [8, 0], sizes = [2, 128], strides = [1, 1]} : vector<16x128xf32> to vector<2x128xf32>
    %cst_24 = arith.constant dense<0.000000e+00> : vector<2x128xf32>
    %95 = tpu.matmul %93, %9, %cst_24 {dimension_numbers = #tpu.dot_dimension_numbers<[1], [0], [0], [1], [0, 0, 1, 1], [], []>} : vector<2x32xf32>, vector<32x128xf32>, vector<2x128xf32> -> vector<2x128xf32>
    %96 = arith.addf %94, %95 : vector<2x128xf32>
    %97 = vector.extract_strided_slice %96 {offsets = [0, 0], sizes = [2, 96], strides = [1, 1]} : vector<2x128xf32> to vector<2x96xf32>
    %98 = arith.negf %97 : vector<2x96xf32>
    %99 = math.exp %98 : vector<2x96xf32>
    %cst_25 = arith.constant 1.000000e+00 : f32
    %100 = vector.broadcast %cst_25 : f32 to vector<2x96xf32>
    %101 = arith.addf %100, %99 : vector<2x96xf32>
    %102 = arith.divf %100, %101 : vector<2x96xf32>
    %103 = vector.extract_strided_slice %96 {offsets = [0, 96], sizes = [2, 32], strides = [1, 1]} : vector<2x128xf32> to vector<2x32xf32>
    %104 = math.tanh %103 : vector<2x32xf32>
    %105 = vector.extract_strided_slice %102 {offsets = [0, 0], sizes = [2, 32], strides = [1, 1]} : vector<2x96xf32> to vector<2x32xf32>
    %106 = vector.extract_strided_slice %102 {offsets = [0, 32], sizes = [2, 32], strides = [1, 1]} : vector<2x96xf32> to vector<2x32xf32>
    %107 = vector.extract_strided_slice %102 {offsets = [0, 64], sizes = [2, 32], strides = [1, 1]} : vector<2x96xf32> to vector<2x32xf32>
    %108 = arith.mulf %106, %91 : vector<2x32xf32>
    %109 = arith.mulf %105, %104 : vector<2x32xf32>
    %110 = arith.addf %108, %109 : vector<2x32xf32>
    %111 = math.tanh %110 : vector<2x32xf32>
    %112 = arith.mulf %107, %111 : vector<2x32xf32>
    %113 = vector.extract_strided_slice %13 {offsets = [10, 0], sizes = [2, 128], strides = [1, 1]} : vector<16x128xf32> to vector<2x128xf32>
    %cst_26 = arith.constant dense<0.000000e+00> : vector<2x128xf32>
    %114 = tpu.matmul %112, %9, %cst_26 {dimension_numbers = #tpu.dot_dimension_numbers<[1], [0], [0], [1], [0, 0, 1, 1], [], []>} : vector<2x32xf32>, vector<32x128xf32>, vector<2x128xf32> -> vector<2x128xf32>
    %115 = arith.addf %113, %114 : vector<2x128xf32>
    %116 = vector.extract_strided_slice %115 {offsets = [0, 0], sizes = [2, 96], strides = [1, 1]} : vector<2x128xf32> to vector<2x96xf32>
    %117 = arith.negf %116 : vector<2x96xf32>
    %118 = math.exp %117 : vector<2x96xf32>
    %cst_27 = arith.constant 1.000000e+00 : f32
    %119 = vector.broadcast %cst_27 : f32 to vector<2x96xf32>
    %120 = arith.addf %119, %118 : vector<2x96xf32>
    %121 = arith.divf %119, %120 : vector<2x96xf32>
    %122 = vector.extract_strided_slice %115 {offsets = [0, 96], sizes = [2, 32], strides = [1, 1]} : vector<2x128xf32> to vector<2x32xf32>
    %123 = math.tanh %122 : vector<2x32xf32>
    %124 = vector.extract_strided_slice %121 {offsets = [0, 0], sizes = [2, 32], strides = [1, 1]} : vector<2x96xf32> to vector<2x32xf32>
    %125 = vector.extract_strided_slice %121 {offsets = [0, 32], sizes = [2, 32], strides = [1, 1]} : vector<2x96xf32> to vector<2x32xf32>
    %126 = vector.extract_strided_slice %121 {offsets = [0, 64], sizes = [2, 32], strides = [1, 1]} : vector<2x96xf32> to vector<2x32xf32>
    %127 = arith.mulf %125, %110 : vector<2x32xf32>
    %128 = arith.mulf %124, %123 : vector<2x32xf32>
    %129 = arith.addf %127, %128 : vector<2x32xf32>
    %130 = math.tanh %129 : vector<2x32xf32>
    %131 = arith.mulf %126, %130 : vector<2x32xf32>
    %132 = vector.extract_strided_slice %13 {offsets = [12, 0], sizes = [2, 128], strides = [1, 1]} : vector<16x128xf32> to vector<2x128xf32>
    %cst_28 = arith.constant dense<0.000000e+00> : vector<2x128xf32>
    %133 = tpu.matmul %131, %9, %cst_28 {dimension_numbers = #tpu.dot_dimension_numbers<[1], [0], [0], [1], [0, 0, 1, 1], [], []>} : vector<2x32xf32>, vector<32x128xf32>, vector<2x128xf32> -> vector<2x128xf32>
    %134 = arith.addf %132, %133 : vector<2x128xf32>
    %135 = vector.extract_strided_slice %134 {offsets = [0, 0], sizes = [2, 96], strides = [1, 1]} : vector<2x128xf32> to vector<2x96xf32>
    %136 = arith.negf %135 : vector<2x96xf32>
    %137 = math.exp %136 : vector<2x96xf32>
    %cst_29 = arith.constant 1.000000e+00 : f32
    %138 = vector.broadcast %cst_29 : f32 to vector<2x96xf32>
    %139 = arith.addf %138, %137 : vector<2x96xf32>
    %140 = arith.divf %138, %139 : vector<2x96xf32>
    %141 = vector.extract_strided_slice %134 {offsets = [0, 96], sizes = [2, 32], strides = [1, 1]} : vector<2x128xf32> to vector<2x32xf32>
    %142 = math.tanh %141 : vector<2x32xf32>
    %143 = vector.extract_strided_slice %140 {offsets = [0, 0], sizes = [2, 32], strides = [1, 1]} : vector<2x96xf32> to vector<2x32xf32>
    %144 = vector.extract_strided_slice %140 {offsets = [0, 32], sizes = [2, 32], strides = [1, 1]} : vector<2x96xf32> to vector<2x32xf32>
    %145 = vector.extract_strided_slice %140 {offsets = [0, 64], sizes = [2, 32], strides = [1, 1]} : vector<2x96xf32> to vector<2x32xf32>
    %146 = arith.mulf %144, %129 : vector<2x32xf32>
    %147 = arith.mulf %143, %142 : vector<2x32xf32>
    %148 = arith.addf %146, %147 : vector<2x32xf32>
    %149 = math.tanh %148 : vector<2x32xf32>
    %150 = arith.mulf %145, %149 : vector<2x32xf32>
    %151 = vector.extract_strided_slice %13 {offsets = [14, 0], sizes = [2, 128], strides = [1, 1]} : vector<16x128xf32> to vector<2x128xf32>
    %cst_30 = arith.constant dense<0.000000e+00> : vector<2x128xf32>
    %152 = tpu.matmul %150, %9, %cst_30 {dimension_numbers = #tpu.dot_dimension_numbers<[1], [0], [0], [1], [0, 0, 1, 1], [], []>} : vector<2x32xf32>, vector<32x128xf32>, vector<2x128xf32> -> vector<2x128xf32>
    %153 = arith.addf %151, %152 : vector<2x128xf32>
    %154 = vector.extract_strided_slice %153 {offsets = [0, 0], sizes = [2, 96], strides = [1, 1]} : vector<2x128xf32> to vector<2x96xf32>
    %155 = arith.negf %154 : vector<2x96xf32>
    %156 = math.exp %155 : vector<2x96xf32>
    %cst_31 = arith.constant 1.000000e+00 : f32
    %157 = vector.broadcast %cst_31 : f32 to vector<2x96xf32>
    %158 = arith.addf %157, %156 : vector<2x96xf32>
    %159 = arith.divf %157, %158 : vector<2x96xf32>
    %160 = vector.extract_strided_slice %153 {offsets = [0, 96], sizes = [2, 32], strides = [1, 1]} : vector<2x128xf32> to vector<2x32xf32>
    %161 = math.tanh %160 : vector<2x32xf32>
    %162 = vector.extract_strided_slice %159 {offsets = [0, 0], sizes = [2, 32], strides = [1, 1]} : vector<2x96xf32> to vector<2x32xf32>
    %163 = vector.extract_strided_slice %159 {offsets = [0, 32], sizes = [2, 32], strides = [1, 1]} : vector<2x96xf32> to vector<2x32xf32>
    %164 = vector.extract_strided_slice %159 {offsets = [0, 64], sizes = [2, 32], strides = [1, 1]} : vector<2x96xf32> to vector<2x32xf32>
    %165 = arith.mulf %163, %148 : vector<2x32xf32>
    %166 = arith.mulf %162, %161 : vector<2x32xf32>
    %167 = arith.addf %165, %166 : vector<2x32xf32>
    %168 = math.tanh %167 : vector<2x32xf32>
    %169 = arith.mulf %164, %168 : vector<2x32xf32>
    %c0_32 = arith.constant 0 : index
    %c0_33 = arith.constant 0 : index
    %c0_34 = arith.constant 0 : index
    %170 = vector.load %arg13[%c0_32, %c0_33, %c0_34] : memref<2x2x32xf32, #tpu.memory_space<vmem>>, vector<1x2x32xf32>
    %171 = vector.shape_cast %170 : vector<1x2x32xf32> to vector<2x32xf32>
    %172 = vector.shape_cast %169 : vector<2x32xf32> to vector<1x2x32xf32>
    tpu.vector_store %arg13[%c0_32, %c0_33, %c0_34], %172 {strides = array<i32>} : memref<2x2x32xf32, #tpu.memory_space<vmem>>, vector<1x2x32xf32>,
    %c0_35 = arith.constant 0 : index
    %c0_36 = arith.constant 0 : index
    %c0_37 = arith.constant 0 : index
    %173 = vector.load %arg14[%c0_35, %c0_36, %c0_37] : memref<2x2x32xf32, #tpu.memory_space<vmem>>, vector<1x2x32xf32>
    %174 = vector.shape_cast %173 : vector<1x2x32xf32> to vector<2x32xf32>
    %175 = vector.shape_cast %167 : vector<2x32xf32> to vector<1x2x32xf32>
    tpu.vector_store %arg14[%c0_35, %c0_36, %c0_37], %175 {strides = array<i32>} : memref<2x2x32xf32, #tpu.memory_space<vmem>>, vector<1x2x32xf32>,
    %176 = tpu.concatenate %36, %55, %74, %93, %112, %131, %150, %169 in 0 : vector<2x32xf32>, vector<2x32xf32>, vector<2x32xf32>, vector<2x32xf32>, vector<2x32xf32>, vector<2x32xf32>, vector<2x32xf32>, vector<2x32xf32> -> vector<16x32xf32>
    %c0_38 = arith.constant 0 : index
    %c0_39 = arith.constant 0 : index
    %177 = vector.load %arg5[%c0_38, %c0_39] : memref<32x128xf32, #tpu.memory_space<vmem>>, vector<32x128xf32>
    %c0_40 = arith.constant 0 : index
    %c0_41 = arith.constant 0 : index
    %178 = vector.load %arg7[%c0_40, %c0_41] : memref<32x128xf32, #tpu.memory_space<vmem>>, vector<32x128xf32>
    %c0_42 = arith.constant 0 : index
    %c0_43 = arith.constant 0 : index
    %179 = vector.load %arg9[%c0_42, %c0_43] : memref<1x128xf32, #tpu.memory_space<vmem>>, vector<1x128xf32>
    %cst_44 = arith.constant dense<0.000000e+00> : vector<16x128xf32>
    %180 = tpu.matmul %176, %177, %cst_44 {dimension_numbers = #tpu.dot_dimension_numbers<[1], [0], [0], [1], [0, 0, 1, 1], [], []>} : vector<16x32xf32>, vector<32x128xf32>, vector<16x128xf32> -> vector<16x128xf32>
    %181 = vector.broadcast %179 : vector<1x128xf32> to vector<16x128xf32>
    %182 = arith.addf %180, %181 : vector<16x128xf32>
    %c1 = arith.constant 1 : index
    %c0_45 = arith.constant 0 : index
    %c0_46 = arith.constant 0 : index
    %183 = vector.load %arg2[%c1, %c0_45, %c0_46] : memref<2x2x32xf32, #tpu.memory_space<vmem>>, vector<1x2x32xf32>
    %184 = vector.shape_cast %183 : vector<1x2x32xf32> to vector<2x32xf32>
    %c1_47 = arith.constant 1 : index
    %c0_48 = arith.constant 0 : index
    %c0_49 = arith.constant 0 : index
    %185 = vector.load %arg3[%c1_47, %c0_48, %c0_49] : memref<2x2x32xf32, #tpu.memory_space<vmem>>, vector<1x2x32xf32>
    %186 = vector.shape_cast %185 : vector<1x2x32xf32> to vector<2x32xf32>
    %187 = vector.extract_strided_slice %182 {offsets = [0, 0], sizes = [2, 128], strides = [1, 1]} : vector<16x128xf32> to vector<2x128xf32>
    %cst_50 = arith.constant dense<0.000000e+00> : vector<2x128xf32>
    %188 = tpu.matmul %184, %178, %cst_50 {dimension_numbers = #tpu.dot_dimension_numbers<[1], [0], [0], [1], [0, 0, 1, 1], [], []>} : vector<2x32xf32>, vector<32x128xf32>, vector<2x128xf32> -> vector<2x128xf32>
    %189 = arith.addf %187, %188 : vector<2x128xf32>
    %190 = vector.extract_strided_slice %189 {offsets = [0, 0], sizes = [2, 96], strides = [1, 1]} : vector<2x128xf32> to vector<2x96xf32>
    %191 = arith.negf %190 : vector<2x96xf32>
    %192 = math.exp %191 : vector<2x96xf32>
    %cst_51 = arith.constant 1.000000e+00 : f32
    %193 = vector.broadcast %cst_51 : f32 to vector<2x96xf32>
    %194 = arith.addf %193, %192 : vector<2x96xf32>
    %195 = arith.divf %193, %194 : vector<2x96xf32>
    %196 = vector.extract_strided_slice %189 {offsets = [0, 96], sizes = [2, 32], strides = [1, 1]} : vector<2x128xf32> to vector<2x32xf32>
    %197 = math.tanh %196 : vector<2x32xf32>
    %198 = vector.extract_strided_slice %195 {offsets = [0, 0], sizes = [2, 32], strides = [1, 1]} : vector<2x96xf32> to vector<2x32xf32>
    %199 = vector.extract_strided_slice %195 {offsets = [0, 32], sizes = [2, 32], strides = [1, 1]} : vector<2x96xf32> to vector<2x32xf32>
    %200 = vector.extract_strided_slice %195 {offsets = [0, 64], sizes = [2, 32], strides = [1, 1]} : vector<2x96xf32> to vector<2x32xf32>
    %201 = arith.mulf %199, %186 : vector<2x32xf32>
    %202 = arith.mulf %198, %197 : vector<2x32xf32>
    %203 = arith.addf %201, %202 : vector<2x32xf32>
    %204 = math.tanh %203 : vector<2x32xf32>
    %205 = arith.mulf %200, %204 : vector<2x32xf32>
    %206 = vector.extract_strided_slice %182 {offsets = [2, 0], sizes = [2, 128], strides = [1, 1]} : vector<16x128xf32> to vector<2x128xf32>
    %cst_52 = arith.constant dense<0.000000e+00> : vector<2x128xf32>
    %207 = tpu.matmul %205, %178, %cst_52 {dimension_numbers = #tpu.dot_dimension_numbers<[1], [0], [0], [1], [0, 0, 1, 1], [], []>} : vector<2x32xf32>, vector<32x128xf32>, vector<2x128xf32> -> vector<2x128xf32>
    %208 = arith.addf %206, %207 : vector<2x128xf32>
    %209 = vector.extract_strided_slice %208 {offsets = [0, 0], sizes = [2, 96], strides = [1, 1]} : vector<2x128xf32> to vector<2x96xf32>
    %210 = arith.negf %209 : vector<2x96xf32>
    %211 = math.exp %210 : vector<2x96xf32>
    %cst_53 = arith.constant 1.000000e+00 : f32
    %212 = vector.broadcast %cst_53 : f32 to vector<2x96xf32>
    %213 = arith.addf %212, %211 : vector<2x96xf32>
    %214 = arith.divf %212, %213 : vector<2x96xf32>
    %215 = vector.extract_strided_slice %208 {offsets = [0, 96], sizes = [2, 32], strides = [1, 1]} : vector<2x128xf32> to vector<2x32xf32>
    %216 = math.tanh %215 : vector<2x32xf32>
    %217 = vector.extract_strided_slice %214 {offsets = [0, 0], sizes = [2, 32], strides = [1, 1]} : vector<2x96xf32> to vector<2x32xf32>
    %218 = vector.extract_strided_slice %214 {offsets = [0, 32], sizes = [2, 32], strides = [1, 1]} : vector<2x96xf32> to vector<2x32xf32>
    %219 = vector.extract_strided_slice %214 {offsets = [0, 64], sizes = [2, 32], strides = [1, 1]} : vector<2x96xf32> to vector<2x32xf32>
    %220 = arith.mulf %218, %203 : vector<2x32xf32>
    %221 = arith.mulf %217, %216 : vector<2x32xf32>
    %222 = arith.addf %220, %221 : vector<2x32xf32>
    %223 = math.tanh %222 : vector<2x32xf32>
    %224 = arith.mulf %219, %223 : vector<2x32xf32>
    %225 = vector.extract_strided_slice %182 {offsets = [4, 0], sizes = [2, 128], strides = [1, 1]} : vector<16x128xf32> to vector<2x128xf32>
    %cst_54 = arith.constant dense<0.000000e+00> : vector<2x128xf32>
    %226 = tpu.matmul %224, %178, %cst_54 {dimension_numbers = #tpu.dot_dimension_numbers<[1], [0], [0], [1], [0, 0, 1, 1], [], []>} : vector<2x32xf32>, vector<32x128xf32>, vector<2x128xf32> -> vector<2x128xf32>
    %227 = arith.addf %225, %226 : vector<2x128xf32>
    %228 = vector.extract_strided_slice %227 {offsets = [0, 0], sizes = [2, 96], strides = [1, 1]} : vector<2x128xf32> to vector<2x96xf32>
    %229 = arith.negf %228 : vector<2x96xf32>
    %230 = math.exp %229 : vector<2x96xf32>
    %cst_55 = arith.constant 1.000000e+00 : f32
    %231 = vector.broadcast %cst_55 : f32 to vector<2x96xf32>
    %232 = arith.addf %231, %230 : vector<2x96xf32>
    %233 = arith.divf %231, %232 : vector<2x96xf32>
    %234 = vector.extract_strided_slice %227 {offsets = [0, 96], sizes = [2, 32], strides = [1, 1]} : vector<2x128xf32> to vector<2x32xf32>
    %235 = math.tanh %234 : vector<2x32xf32>
    %236 = vector.extract_strided_slice %233 {offsets = [0, 0], sizes = [2, 32], strides = [1, 1]} : vector<2x96xf32> to vector<2x32xf32>
    %237 = vector.extract_strided_slice %233 {offsets = [0, 32], sizes = [2, 32], strides = [1, 1]} : vector<2x96xf32> to vector<2x32xf32>
    %238 = vector.extract_strided_slice %233 {offsets = [0, 64], sizes = [2, 32], strides = [1, 1]} : vector<2x96xf32> to vector<2x32xf32>
    %239 = arith.mulf %237, %222 : vector<2x32xf32>
    %240 = arith.mulf %236, %235 : vector<2x32xf32>
    %241 = arith.addf %239, %240 : vector<2x32xf32>
    %242 = math.tanh %241 : vector<2x32xf32>
    %243 = arith.mulf %238, %242 : vector<2x32xf32>
    %244 = vector.extract_strided_slice %182 {offsets = [6, 0], sizes = [2, 128], strides = [1, 1]} : vector<16x128xf32> to vector<2x128xf32>
    %cst_56 = arith.constant dense<0.000000e+00> : vector<2x128xf32>
    %245 = tpu.matmul %243, %178, %cst_56 {dimension_numbers = #tpu.dot_dimension_numbers<[1], [0], [0], [1], [0, 0, 1, 1], [], []>} : vector<2x32xf32>, vector<32x128xf32>, vector<2x128xf32> -> vector<2x128xf32>
    %246 = arith.addf %244, %245 : vector<2x128xf32>
    %247 = vector.extract_strided_slice %246 {offsets = [0, 0], sizes = [2, 96], strides = [1, 1]} : vector<2x128xf32> to vector<2x96xf32>
    %248 = arith.negf %247 : vector<2x96xf32>
    %249 = math.exp %248 : vector<2x96xf32>
    %cst_57 = arith.constant 1.000000e+00 : f32
    %250 = vector.broadcast %cst_57 : f32 to vector<2x96xf32>
    %251 = arith.addf %250, %249 : vector<2x96xf32>
    %252 = arith.divf %250, %251 : vector<2x96xf32>
    %253 = vector.extract_strided_slice %246 {offsets = [0, 96], sizes = [2, 32], strides = [1, 1]} : vector<2x128xf32> to vector<2x32xf32>
    %254 = math.tanh %253 : vector<2x32xf32>
    %255 = vector.extract_strided_slice %252 {offsets = [0, 0], sizes = [2, 32], strides = [1, 1]} : vector<2x96xf32> to vector<2x32xf32>
    %256 = vector.extract_strided_slice %252 {offsets = [0, 32], sizes = [2, 32], strides = [1, 1]} : vector<2x96xf32> to vector<2x32xf32>
    %257 = vector.extract_strided_slice %252 {offsets = [0, 64], sizes = [2, 32], strides = [1, 1]} : vector<2x96xf32> to vector<2x32xf32>
    %258 = arith.mulf %256, %241 : vector<2x32xf32>
    %259 = arith.mulf %255, %254 : vector<2x32xf32>
    %260 = arith.addf %258, %259 : vector<2x32xf32>
    %261 = math.tanh %260 : vector<2x32xf32>
    %262 = arith.mulf %257, %261 : vector<2x32xf32>
    %263 = vector.extract_strided_slice %182 {offsets = [8, 0], sizes = [2, 128], strides = [1, 1]} : vector<16x128xf32> to vector<2x128xf32>
    %cst_58 = arith.constant dense<0.000000e+00> : vector<2x128xf32>
    %264 = tpu.matmul %262, %178, %cst_58 {dimension_numbers = #tpu.dot_dimension_numbers<[1], [0], [0], [1], [0, 0, 1, 1], [], []>} : vector<2x32xf32>, vector<32x128xf32>, vector<2x128xf32> -> vector<2x128xf32>
    %265 = arith.addf %263, %264 : vector<2x128xf32>
    %266 = vector.extract_strided_slice %265 {offsets = [0, 0], sizes = [2, 96], strides = [1, 1]} : vector<2x128xf32> to vector<2x96xf32>
    %267 = arith.negf %266 : vector<2x96xf32>
    %268 = math.exp %267 : vector<2x96xf32>
    %cst_59 = arith.constant 1.000000e+00 : f32
    %269 = vector.broadcast %cst_59 : f32 to vector<2x96xf32>
    %270 = arith.addf %269, %268 : vector<2x96xf32>
    %271 = arith.divf %269, %270 : vector<2x96xf32>
    %272 = vector.extract_strided_slice %265 {offsets = [0, 96], sizes = [2, 32], strides = [1, 1]} : vector<2x128xf32> to vector<2x32xf32>
    %273 = math.tanh %272 : vector<2x32xf32>
    %274 = vector.extract_strided_slice %271 {offsets = [0, 0], sizes = [2, 32], strides = [1, 1]} : vector<2x96xf32> to vector<2x32xf32>
    %275 = vector.extract_strided_slice %271 {offsets = [0, 32], sizes = [2, 32], strides = [1, 1]} : vector<2x96xf32> to vector<2x32xf32>
    %276 = vector.extract_strided_slice %271 {offsets = [0, 64], sizes = [2, 32], strides = [1, 1]} : vector<2x96xf32> to vector<2x32xf32>
    %277 = arith.mulf %275, %260 : vector<2x32xf32>
    %278 = arith.mulf %274, %273 : vector<2x32xf32>
    %279 = arith.addf %277, %278 : vector<2x32xf32>
    %280 = math.tanh %279 : vector<2x32xf32>
    %281 = arith.mulf %276, %280 : vector<2x32xf32>
    %282 = vector.extract_strided_slice %182 {offsets = [10, 0], sizes = [2, 128], strides = [1, 1]} : vector<16x128xf32> to vector<2x128xf32>
    %cst_60 = arith.constant dense<0.000000e+00> : vector<2x128xf32>
    %283 = tpu.matmul %281, %178, %cst_60 {dimension_numbers = #tpu.dot_dimension_numbers<[1], [0], [0], [1], [0, 0, 1, 1], [], []>} : vector<2x32xf32>, vector<32x128xf32>, vector<2x128xf32> -> vector<2x128xf32>
    %284 = arith.addf %282, %283 : vector<2x128xf32>
    %285 = vector.extract_strided_slice %284 {offsets = [0, 0], sizes = [2, 96], strides = [1, 1]} : vector<2x128xf32> to vector<2x96xf32>
    %286 = arith.negf %285 : vector<2x96xf32>
    %287 = math.exp %286 : vector<2x96xf32>
    %cst_61 = arith.constant 1.000000e+00 : f32
    %288 = vector.broadcast %cst_61 : f32 to vector<2x96xf32>
    %289 = arith.addf %288, %287 : vector<2x96xf32>
    %290 = arith.divf %288, %289 : vector<2x96xf32>
    %291 = vector.extract_strided_slice %284 {offsets = [0, 96], sizes = [2, 32], strides = [1, 1]} : vector<2x128xf32> to vector<2x32xf32>
    %292 = math.tanh %291 : vector<2x32xf32>
    %293 = vector.extract_strided_slice %290 {offsets = [0, 0], sizes = [2, 32], strides = [1, 1]} : vector<2x96xf32> to vector<2x32xf32>
    %294 = vector.extract_strided_slice %290 {offsets = [0, 32], sizes = [2, 32], strides = [1, 1]} : vector<2x96xf32> to vector<2x32xf32>
    %295 = vector.extract_strided_slice %290 {offsets = [0, 64], sizes = [2, 32], strides = [1, 1]} : vector<2x96xf32> to vector<2x32xf32>
    %296 = arith.mulf %294, %279 : vector<2x32xf32>
    %297 = arith.mulf %293, %292 : vector<2x32xf32>
    %298 = arith.addf %296, %297 : vector<2x32xf32>
    %299 = math.tanh %298 : vector<2x32xf32>
    %300 = arith.mulf %295, %299 : vector<2x32xf32>
    %301 = vector.extract_strided_slice %182 {offsets = [12, 0], sizes = [2, 128], strides = [1, 1]} : vector<16x128xf32> to vector<2x128xf32>
    %cst_62 = arith.constant dense<0.000000e+00> : vector<2x128xf32>
    %302 = tpu.matmul %300, %178, %cst_62 {dimension_numbers = #tpu.dot_dimension_numbers<[1], [0], [0], [1], [0, 0, 1, 1], [], []>} : vector<2x32xf32>, vector<32x128xf32>, vector<2x128xf32> -> vector<2x128xf32>
    %303 = arith.addf %301, %302 : vector<2x128xf32>
    %304 = vector.extract_strided_slice %303 {offsets = [0, 0], sizes = [2, 96], strides = [1, 1]} : vector<2x128xf32> to vector<2x96xf32>
    %305 = arith.negf %304 : vector<2x96xf32>
    %306 = math.exp %305 : vector<2x96xf32>
    %cst_63 = arith.constant 1.000000e+00 : f32
    %307 = vector.broadcast %cst_63 : f32 to vector<2x96xf32>
    %308 = arith.addf %307, %306 : vector<2x96xf32>
    %309 = arith.divf %307, %308 : vector<2x96xf32>
    %310 = vector.extract_strided_slice %303 {offsets = [0, 96], sizes = [2, 32], strides = [1, 1]} : vector<2x128xf32> to vector<2x32xf32>
    %311 = math.tanh %310 : vector<2x32xf32>
    %312 = vector.extract_strided_slice %309 {offsets = [0, 0], sizes = [2, 32], strides = [1, 1]} : vector<2x96xf32> to vector<2x32xf32>
    %313 = vector.extract_strided_slice %309 {offsets = [0, 32], sizes = [2, 32], strides = [1, 1]} : vector<2x96xf32> to vector<2x32xf32>
    %314 = vector.extract_strided_slice %309 {offsets = [0, 64], sizes = [2, 32], strides = [1, 1]} : vector<2x96xf32> to vector<2x32xf32>
    %315 = arith.mulf %313, %298 : vector<2x32xf32>
    %316 = arith.mulf %312, %311 : vector<2x32xf32>
    %317 = arith.addf %315, %316 : vector<2x32xf32>
    %318 = math.tanh %317 : vector<2x32xf32>
    %319 = arith.mulf %314, %318 : vector<2x32xf32>
    %320 = vector.extract_strided_slice %182 {offsets = [14, 0], sizes = [2, 128], strides = [1, 1]} : vector<16x128xf32> to vector<2x128xf32>
    %cst_64 = arith.constant dense<0.000000e+00> : vector<2x128xf32>
    %321 = tpu.matmul %319, %178, %cst_64 {dimension_numbers = #tpu.dot_dimension_numbers<[1], [0], [0], [1], [0, 0, 1, 1], [], []>} : vector<2x32xf32>, vector<32x128xf32>, vector<2x128xf32> -> vector<2x128xf32>
    %322 = arith.addf %320, %321 : vector<2x128xf32>
    %323 = vector.extract_strided_slice %322 {offsets = [0, 0], sizes = [2, 96], strides = [1, 1]} : vector<2x128xf32> to vector<2x96xf32>
    %324 = arith.negf %323 : vector<2x96xf32>
    %325 = math.exp %324 : vector<2x96xf32>
    %cst_65 = arith.constant 1.000000e+00 : f32
    %326 = vector.broadcast %cst_65 : f32 to vector<2x96xf32>
    %327 = arith.addf %326, %325 : vector<2x96xf32>
    %328 = arith.divf %326, %327 : vector<2x96xf32>
    %329 = vector.extract_strided_slice %322 {offsets = [0, 96], sizes = [2, 32], strides = [1, 1]} : vector<2x128xf32> to vector<2x32xf32>
    %330 = math.tanh %329 : vector<2x32xf32>
    %331 = vector.extract_strided_slice %328 {offsets = [0, 0], sizes = [2, 32], strides = [1, 1]} : vector<2x96xf32> to vector<2x32xf32>
    %332 = vector.extract_strided_slice %328 {offsets = [0, 32], sizes = [2, 32], strides = [1, 1]} : vector<2x96xf32> to vector<2x32xf32>
    %333 = vector.extract_strided_slice %328 {offsets = [0, 64], sizes = [2, 32], strides = [1, 1]} : vector<2x96xf32> to vector<2x32xf32>
    %334 = arith.mulf %332, %317 : vector<2x32xf32>
    %335 = arith.mulf %331, %330 : vector<2x32xf32>
    %336 = arith.addf %334, %335 : vector<2x32xf32>
    %337 = math.tanh %336 : vector<2x32xf32>
    %338 = arith.mulf %333, %337 : vector<2x32xf32>
    %c1_66 = arith.constant 1 : index
    %c0_67 = arith.constant 0 : index
    %c0_68 = arith.constant 0 : index
    %339 = vector.load %arg13[%c1_66, %c0_67, %c0_68] : memref<2x2x32xf32, #tpu.memory_space<vmem>>, vector<1x2x32xf32>
    %340 = vector.shape_cast %339 : vector<1x2x32xf32> to vector<2x32xf32>
    %341 = vector.shape_cast %338 : vector<2x32xf32> to vector<1x2x32xf32>
    tpu.vector_store %arg13[%c1_66, %c0_67, %c0_68], %341 {strides = array<i32>} : memref<2x2x32xf32, #tpu.memory_space<vmem>>, vector<1x2x32xf32>,
    %c1_69 = arith.constant 1 : index
    %c0_70 = arith.constant 0 : index
    %c0_71 = arith.constant 0 : index
    %342 = vector.load %arg14[%c1_69, %c0_70, %c0_71] : memref<2x2x32xf32, #tpu.memory_space<vmem>>, vector<1x2x32xf32>
    %343 = vector.shape_cast %342 : vector<1x2x32xf32> to vector<2x32xf32>
    %344 = vector.shape_cast %336 : vector<2x32xf32> to vector<1x2x32xf32>
    tpu.vector_store %arg14[%c1_69, %c0_70, %c0_71], %344 {strides = array<i32>} : memref<2x2x32xf32, #tpu.memory_space<vmem>>, vector<1x2x32xf32>,
    %345 = tpu.concatenate %205, %224, %243, %262, %281, %300, %319, %338 in 0 : vector<2x32xf32>, vector<2x32xf32>, vector<2x32xf32>, vector<2x32xf32>, vector<2x32xf32>, vector<2x32xf32>, vector<2x32xf32>, vector<2x32xf32> -> vector<16x32xf32>
    %c0_72 = arith.constant 0 : index
    %c0_73 = arith.constant 0 : index
    %346 = vector.load %arg10[%c0_72, %c0_73] : memref<32x16xf32, #tpu.memory_space<vmem>>, vector<32x16xf32>
    %cst_74 = arith.constant dense<0.000000e+00> : vector<16x16xf32>
    %347 = tpu.matmul %345, %346, %cst_74 {dimension_numbers = #tpu.dot_dimension_numbers<[1], [0], [0], [1], [0, 0, 1, 1], [], []>} : vector<16x32xf32>, vector<32x16xf32>, vector<16x16xf32> -> vector<16x16xf32>
    %c0_75 = arith.constant 0 : index
    %c0_76 = arith.constant 0 : index
    %348 = vector.load %arg11[%c0_75, %c0_76] : memref<1x16xf32, #tpu.memory_space<vmem>>, vector<1x16xf32>
    %349 = vector.broadcast %348 : vector<1x16xf32> to vector<16x16xf32>
    %350 = arith.addf %347, %349 : vector<16x16xf32>
    %cst_77 = arith.constant dense<0xFF800000> : vector<16xf32>
    %351 = vector.multi_reduction <maximumf>, %350, %cst_77 [1] : vector<16x16xf32> to vector<16xf32>
    %352 = vector.shape_cast %351 : vector<16xf32> to vector<16x1xf32>
    %353 = vector.broadcast %352 : vector<16x1xf32> to vector<16x16xf32>
    %354 = arith.subf %350, %353 : vector<16x16xf32>
    %355 = math.exp %354 : vector<16x16xf32>
    %cst_78 = arith.constant dense<0.000000e+00> : vector<16xf32>
    %356 = vector.multi_reduction <add>, %355, %cst_78 [1] : vector<16x16xf32> to vector<16xf32>
    %357 = vector.shape_cast %356 : vector<16xf32> to vector<16x1xf32>
    %358 = math.log %357 : vector<16x1xf32>
    %359 = vector.broadcast %358 : vector<16x1xf32> to vector<16x16xf32>
    %360 = arith.subf %354, %359 : vector<16x16xf32>
    %361 = vector.extract_strided_slice %360 {offsets = [0, 0], sizes = [2, 16], strides = [1, 1]} : vector<16x16xf32> to vector<2x16xf32>
    %362 = vector.extract_strided_slice %360 {offsets = [2, 0], sizes = [2, 16], strides = [1, 1]} : vector<16x16xf32> to vector<2x16xf32>
    %363 = vector.extract_strided_slice %360 {offsets = [4, 0], sizes = [2, 16], strides = [1, 1]} : vector<16x16xf32> to vector<2x16xf32>
    %364 = vector.extract_strided_slice %360 {offsets = [6, 0], sizes = [2, 16], strides = [1, 1]} : vector<16x16xf32> to vector<2x16xf32>
    %365 = vector.extract_strided_slice %360 {offsets = [8, 0], sizes = [2, 16], strides = [1, 1]} : vector<16x16xf32> to vector<2x16xf32>
    %366 = vector.extract_strided_slice %360 {offsets = [10, 0], sizes = [2, 16], strides = [1, 1]} : vector<16x16xf32> to vector<2x16xf32>
    %367 = vector.extract_strided_slice %360 {offsets = [12, 0], sizes = [2, 16], strides = [1, 1]} : vector<16x16xf32> to vector<2x16xf32>
    %368 = vector.extract_strided_slice %360 {offsets = [14, 0], sizes = [2, 16], strides = [1, 1]} : vector<16x16xf32> to vector<2x16xf32>
    %369 = tpu.concatenate %361, %362, %363, %364, %365, %366, %367, %368 in 1 : vector<2x16xf32>, vector<2x16xf32>, vector<2x16xf32>, vector<2x16xf32>, vector<2x16xf32>, vector<2x16xf32>, vector<2x16xf32>, vector<2x16xf32> -> vector<2x128xf32>
    %c0_79 = arith.constant 0 : index
    %c0_80 = arith.constant 0 : index
    %370 = vector.load %arg12[%c0_79, %c0_80] : memref<2x128xf32, #tpu.memory_space<vmem>>, vector<2x128xf32>
    tpu.vector_store %arg12[%c0_79, %c0_80], %369 {strides = array<i32>} : memref<2x128xf32, #tpu.memory_space<vmem>>, vector<2x128xf32>,
    return
  }
}

</mosaic_0001>

<bundles_post_ra>
// kernel: name_generator_forward.1
= control target key start
LH: loop header
LB: loop body
LE: loop exit
PB: predicated region body
PF: predicated region fallthrough
CT: control target
= control target key end

     0   :  { %20 = vsyncpa [#allocation3], 0  ;;  %s2370_s0 = inlined_call_operand.vmem [shape: s32[16,1], index: 0, kind: input, shape index: {}]   ;;  %s2371_s1 = inlined_call_operand.hbm [shape: f32[16,32], index: 1, kind: input, shape index: {}]   ;;  %s2372_s2 = inlined_call_operand.vmem [shape: f32[2,2,32], index: 2, kind: input, shape index: {}]   ;;  %s2373_s3 = inlined_call_operand.vmem [shape: f32[2,2,32], index: 3, kind: input, shape index: {}]   ;;  %s2374_s4 = inlined_call_operand.vmem [shape: f32[32,128], index: 4, kind: input, shape index: {}]   ;;  %s2375_s5 = inlined_call_operand.vmem [shape: f32[32,128], index: 5, kind: input, shape index: {}]   ;;  %s2376_s6 = inlined_call_operand.hbm [shape: f32[32,128], index: 6, kind: input, shape index: {}]   ;;  %s2377_s7 = inlined_call_operand.hbm [shape: f32[32,128], index: 7, kind: input, shape index: {}]   ;;  %s2378_s8 = inlined_call_operand.vmem [shape: f32[1,128], index: 8, kind: input, shape index: {}]   ;;  %s2379_s9 = inlined_call_operand.vmem [shape: f32[1,128], index: 9, kind: input, shape index: {}]   ;;  %s2380_s10 = inlined_call_operand.vmem [shape: f32[32,16], index: 10, kind: input, shape index: {}]   ;;  %s2381_s11 = inlined_call_operand.hbm [shape: f32[1,16], index: 11, kind: input, shape index: {}]   ;;  %s2382_s12 = inlined_call_operand.vmem [shape: f32[2,128], index: 12, kind: output, shape index: {0}]   ;;  %s2383_s13 = inlined_call_operand.hbm [shape: f32[2,2,32], index: 13, kind: output, shape index: {1}]   ;;  %s2384_s14 = inlined_call_operand.hbm [shape: f32[2,2,32], index: 14, kind: output, shape index: {2}]  }
   0x1   :  { %21 = vsyncpa [#allocation6], 0 }
   0x2   :  { %22 = vsyncpa [#allocation9], 0 }
   0x3   :  { %23 = vsyncpa [#allocation4], 0 }
   0x4   :  { %24 = vsyncpa [#allocation12], 0  ;;  %s52_s15 = sshll.u32 %s2376_s6, 4  ;;  %s1892_s16 = smov [#allocation5]   ;;  %s53_s15 = int_to_ptr.hbm [resolvable:$true] %s52_s15 }
   0x5   :  { %s54_s17 = sshll.u32 %s1892_s16, 4  ;;  %s31_s20 = sshll.u32 %s2371_s1, 4  ;;  %s55_s17 = int_to_ptr.vmem [resolvable:$true] %s54_s17  ;;  %s32_s20 = int_to_ptr.hbm [resolvable:$true] %s31_s20 }
   0x6   :  { %s1893_s21 = smov 128   ;;  %s1894_s22 = smov 8  }
   0x7   :  { %60 = dma.hbm_to_vmem [thread:$0]  %s53_s15, 512, %s55_s17, [#allocation6], %s1893_s21, %s1893_s21, %s1894_s22  }
   0x8   :  { %s1895_s23 = smov [#allocation2]   ;;  %s65_s27 = sshll.u32 %s2377_s7, 4  ;;  %s66_s27 = int_to_ptr.hbm [resolvable:$true] %s65_s27 }
   0x9   :  { %s33_s24 = sshll.u32 %s1895_s23, 4  ;;  %s85_s29 = sshll.u32 %s2381_s11, 4  ;;  %s34_s24 = int_to_ptr.vmem [resolvable:$true] %s33_s24  ;;  %s86_s29 = int_to_ptr.hbm [resolvable:$true] %s85_s29 }
   0xa   :  { %39 = dma.hbm_to_vmem [thread:$0]  %s32_s20, 256, %s34_s24, [#allocation3], %s1893_s21, %s1893_s21, %s1894_s22  }
   0xb   :  { %s1896_s30 = smov [#allocation7]   ;;  %s1897_s1 = smov [#allocation8]  }
   0xc   :  { %s67_s16 = sshll.u32 %s1896_s30, 4  ;;  %s87_s15 = sshll.u32 %s1897_s1, 4  ;;  %s68_s16 = int_to_ptr.vmem [resolvable:$true] %s67_s16  ;;  %s88_s15 = int_to_ptr.vmem [resolvable:$true] %s87_s15 }
   0xd   :  { %73 = dma.hbm_to_vmem [thread:$0]  %s66_s27, 512, %s68_s16, [#allocation6], %s1893_s21, %s1893_s21, %s1894_s22  }
   0xe   :  { %90 = dma.hbm_to_vmem [thread:$0]  %s86_s29, 16, %s88_s15, [#allocation9]  }
   0xf   :  { %1882 = dma.done.wait [#allocation3], 256  }
  0x10   :  { %1883 = vsyncadd [#allocation3], 4294967040 }
  0x11   :  { %1884 = dma.done.wait [#allocation6], 1024  }
  0x12   :  { %1885 = vsyncadd [#allocation6], 4294966272 }
  0x13   :  { %1886 = dma.done.wait [#allocation9], 16  }
  0x14   :  { %1887 = vsyncadd [#allocation9], 4294967280  ;;  %v1898_v0 = vmov 0   ;;  %v107_v1 = vld [vmem:[%s2370_s0] sm:$0xff]  ;;  %v124_v2 = vld [vmem:[#allocation2 + $0x8] sm:$0xff]  ;;  %vm167_vm0 = vcmask 261120   ;;  %v109_v12 = vlaneseq }
  0x15   :  { %1598 = vset.pattern.permute.xlu0 %v1898_v0  ;;  %146 = vmatpush.msra.mxu0 %v124_v2  ;;  %v123_v3 = vld [vmem:[#allocation2] sm:$0xff]  ;;  %v2000_v4 = vld [vmem:[#allocation5 + $0x18] sm:$0xff]  ;;  %v158_v6 = vld [vmem:[%s2374_s4 + $0x18] sm:$0xff]  ;;  %vm125_vm1 = vcmask 130048   ;;  %v1899_v15 = vmov 0.0   ;;  %s1900_s28 = smov 32  }
  0x16   :  { %112 = vperm.xlu0 %1598, %v107_v1   ;;  %v2002_v5 = vld [vmem:[#allocation5 + $0x10] sm:$0xff]  ;;  %214 = vmatpush.msra.mxu3 %v2000_v4  ;;  %v157_v7 = vld [vmem:[%s2374_s4 + $0x10] sm:$0xff]  ;;  %v2011_v8 = vld [vmem:[#allocation5 + $0x8] sm:$0xff]  ;;  %v2045_v13 = vand.u32 127, %v109_v12  ;;  %vm760_vm15 = vcmask 1041408   ;;  %s1903_s29 = smov 16  }
  0x17   :  { %147 = vmatpush.msra.mxu0 %v123_v3  ;;  %186 = vmatpush.msra.mxu1 %v158_v6  ;;  %v156_v9 = vld [vmem:[%s2374_s4 + $0x8] sm:$0xff]  ;;  %v2019_v10 = vld [vmem:[#allocation5] sm:$0xff]  ;;  %v197_v11 = vld [vmem:[%s2372_s2] sm:$0x3]  ;;  %s1904_s30 = smov 96   ;;  %s1905_s16 = smov 80  }
  0x18   :  { %351 = vmatpush.msra.mxu2 %v2000_v4  ;;  %215 = vmatpush.msra.mxu3 %v2002_v5  ;;  %v155_v17 = vld [vmem:[%s2374_s4] sm:$0xff]  ;;  %s1907_s1 = smov [#allocation10]   ;;  %s1501_s11 = sshll.u32 %s2383_s13, 4  ;;  %s1502_s11 = int_to_ptr.hbm [resolvable:$true] %s1501_s11 }
  0x19   :  { %491 = vmatpush.msrb.mxu0 %v2000_v4  ;;  %187 = vmatpush.msra.mxu1 %v157_v7  ;;  %v198_v18 = vld [vmem:[%s2373_s3] sm:$0x3]  ;;  %s1499_s15 = sshll.u32 %s1907_s1, 4  ;;  %s1908_s18 = smov 2   ;;  %s1500_s15 = int_to_ptr.vmem [resolvable:$true] %s1499_s15 }
  0x1a   :  { %352 = vmatpush.msra.mxu2 %v2002_v5  ;;  %216 = vmatpush.msra.mxu3 %v2011_v8  ;;  %v2065_v20 = vld [vmem:[%s2378_s8] ss:$0 sm:$0xff]  ;;  %s1901_s8 = smov 64   ;;  %s1909_s13 = smov [#allocation11]  }
  0x1b   :  { %492 = vmatpush.msrb.mxu0 %v2002_v5  ;;  %188 = vmatpush.msra.mxu1 %v156_v9  ;;  %s1514_s20 = sshll.u32 %s2384_s14, 4  ;;  %s1515_s20 = int_to_ptr.hbm [resolvable:$true] %s1514_s20 }
  0x1c   :  { %353 = vmatpush.msra.mxu2 %v2011_v8  ;;  %217 = vmatpush.msra.mxu3 %v2019_v10 }
  0x1d   :  { %493 = vmatpush.msrb.mxu0 %v2011_v8  ;;  %1542 = vmatmul.msk.f32.vlgmr.msra.gmra.mxu3 %vm167_vm0, %v197_v11 }
  0x1e   :  { %354 = vmatpush.msra.mxu2 %v2019_v10  ;;  %281 = vmatpush.msrb.mxu3 %v2000_v4 }
  0x1f   :  { %494 = vmatpush.msrb.mxu0 %v2019_v10  ;;  %189 = vmatpush.msra.mxu1 %v155_v17 }
  0x20   :  { %627 = vmatpush.msrb.mxu2 %v2000_v4  ;;  %282 = vmatpush.msrb.mxu3 %v2002_v5 }
  0x21   :  { %557 = vmatpush.msrb.mxu1 %v2000_v4  ;;  %244 = vrot.lane.b32.xlu1 %v198_v18, %s1900_s28 }
  0x22   :  { %628 = vmatpush.msrb.mxu2 %v2002_v5  ;;  %283 = vmatpush.msrb.mxu3 %v2011_v8 }
  0x23   :  { %558 = vmatpush.msrb.mxu1 %v2002_v5 }
  0x24   :  { %629 = vmatpush.msrb.mxu2 %v2011_v8  ;;  %284 = vmatpush.msrb.mxu3 %v2019_v10 }
  0x25   :  { %559 = vmatpush.msrb.mxu1 %v2011_v8 }
  0x26   :  { %421 = vmatpush.msra.mxu3 %v2000_v4  ;;  %630 = vmatpush.msrb.mxu2 %v2019_v10 }
  0x27   :  { %560 = vmatpush.msrb.mxu1 %v2019_v10 }
  0x28   :  { %422 = vmatpush.msra.mxu3 %v2002_v5 }
  0x2a   :  { %423 = vmatpush.msra.mxu3 %v2011_v8 }
  0x2c   :  { %424 = vmatpush.msra.mxu3 %v2019_v10 }
  0x88   :  { %v113_v14 = vpop.permute.xlu0 %112 }
  0x89   :  { %vm117_vm2 = vcmp.eq.s32.totalorder %v113_v14, %v2045_v13 }
  0x8a   :  { %v1536_v16 = vsel %vm117_vm2, 1.0, %v1899_v15  ;;  %vm762_vm2 = vcmask 1043456  }
  0x8b   :  { %1538 = vmatmul.msk.f32.vlgmr.msra.gmra.mxu0 %vm125_vm1, %v1536_v16 }
  0x93   :  { %v245_v41 = vpop.permute.xlu1 %244 }
  0xa0   :  { %v219_v22 = vpop.f32.mrf.mxu3 }
 0x108   :  { %v149_v19 = vpop.f32.mrf.mxu0 }
 0x109   :  { %1540 = vmatmul.msk.f32.vlgmr.msra.gmra.mxu1 %vm167_vm0, %v149_v19 }
 0x186   :  { %v191_v21 = vpop.f32.mrf.mxu1 }
 0x187   :  { %v2068_v23 = vadd.f32 %v2065_v20, %v191_v21 }
 0x189   :  { %v222_v24 = vadd.f32 %v219_v22, %v2068_v23 }
 0x18b   :  { %1602 = vtanh.f32 %v222_v24  ;;  %v1543_v26 = vmul.f32 -1.442695, %v222_v24 }
 0x18d   :  { %1604 = vpow2.f32 %v1543_v26 }
 0x191   :  { %v1603_v25 = vpop.eup %1602 }
 0x192   :  { %249 = vrot.lane.b32.xlu0 %v1603_v25, %s1900_s28 }
 0x193   :  { %v1605_v27 = vpop.eup %1604 }
 0x194   :  { %v226_v28 = vadd.f32 1.0, %v1605_v27 }
 0x196   :  { %1606 = vrcp.f32 %v226_v28  ;;  %v238_v34 = vand.u32 2147483648, %v226_v28  ;;  %vm232_vm4 = vweird.f32 %v226_v28  ;;  %v236_v35 = vand.u32 2147483647, %v226_v28 }
 0x198   :  { %v239_v37 = vor.u32 1.1754944e-38, %v238_v34  ;;  %vm237_vm6 = vcmp.eq.f32.partialorder %v236_v35, 8.507059e+37 }
 0x19c   :  { %v1607_v29 = vpop.eup %1606 }
 0x19d   :  { %v228_v30 = vmul.f32 %v1607_v29, %v226_v28  ;;  %vm233_vm3 = vweird.f32 %v1607_v29 }
 0x19e   :  { %vm234_vm5 = vmor %vm232_vm4, %vm233_vm3 }
 0x19f   :  { %v229_v31 = vsub.f32 1.0, %v228_v30 }
 0x1a1   :  { %v230_v32 = vmul.f32 %v1607_v29, %v229_v31 }
 0x1a3   :  { %v231_v33 = vadd.f32 %v1607_v29, %v230_v32 }
 0x1a5   :  { %v235_v36 = vsel %vm234_vm5, %v1607_v29, %v231_v33 }
 0x1a6   :  { %v240_v38 = vsel %vm237_vm6, %v239_v37, %v235_v36 }
 0x1a7   :  { %v247_v42 = vmul.f32 %v245_v41, %v240_v38  ;;  %v108_v41 = vld [vmem:[%s2370_s0 + $0x8] sm:$0xff]  ;;  %s1906_s0 = smov 112  }
 0x204   :  { %v250_v39 = vpop.permute.xlu0 %249 }
 0x205   :  { %v252_v40 = vmul.f32 %v250_v39, %v240_v38 }
 0x207   :  { %254 = vrot.lane.b32.xlu1 %v252_v40, %s1900_s28 }
 0x279   :  { %v255_v43 = vpop.permute.xlu1 %254 }
 0x27a   :  { %v257_v44 = vadd.f32 %v255_v43, %v247_v42 }
 0x27c   :  { %1608 = vtanh.f32 %v257_v44 }
 0x282   :  { %v1609_v45 = vpop.eup %1608 }
 0x283   :  { %260 = vrot.lane.b32.xlu2 %v1609_v45, %s1900_s28 }
 0x2dd   :  { %v261_v46 = vpop.permute.xlu2 %260 }
 0x2de   :  { %v2074_v47 = vmul.f32 %v261_v46, %v240_v38 }
 0x2e0   :  { %265 = vrot.lane.b32.xlu2 %v2074_v47, %s1901_s8 }
 0x33a   :  { %v266_v48 = vpop.permute.xlu2 %265 }
 0x33b   :  { %1544 = vmatmul.msk.f32.vlgmr.msrb.gmra.mxu3 %vm167_vm0, %v266_v48 }
 0x33c   :  { %697 = vmatpush.msrb.mxu3 %v2000_v4  ;;  %v314_v4 = vrot.slane %v257_v44, 6 }
 0x33e   :  { %698 = vmatpush.msrb.mxu3 %v2002_v5 }
 0x340   :  { %699 = vmatpush.msrb.mxu3 %v2011_v8 }
 0x342   :  { %700 = vmatpush.msrb.mxu3 %v2019_v10 }
 0x3be   :  { %v286_v49 = vpop.f32.mrf.mxu3 }
 0x3bf   :  { %v290_v50 = vrot.slane %v286_v49, 6 }
 0x3c1   :  { %v292_v51 = vadd.f32 %v290_v50, %v2068_v23 }
 0x3c3   :  { %1610 = vtanh.f32 %v292_v51  ;;  %v1545_v53 = vmul.f32 -1.442695, %v292_v51 }
 0x3c5   :  { %1612 = vpow2.f32 %v1545_v53 }
 0x3c9   :  { %v1611_v52 = vpop.eup %1610 }
 0x3ca   :  { %318 = vrot.lane.b32.xlu0 %v1611_v52, %s1900_s28 }
 0x3cb   :  { %v1613_v54 = vpop.eup %1612 }
 0x3cc   :  { %v296_v55 = vadd.f32 1.0, %v1613_v54 }
 0x3ce   :  { %1614 = vrcp.f32 %v296_v55  ;;  %v308_v61 = vand.u32 2147483648, %v296_v55  ;;  %vm302_vm8 = vweird.f32 %v296_v55  ;;  %v306_v62 = vand.u32 2147483647, %v296_v55 }
 0x3d0   :  { %v309_v0 = vor.u32 1.1754944e-38, %v308_v61  ;;  %vm307_vm10 = vcmp.eq.f32.partialorder %v306_v62, 8.507059e+37 }
 0x3d4   :  { %v1615_v56 = vpop.eup %1614 }
 0x3d5   :  { %v298_v57 = vmul.f32 %v1615_v56, %v296_v55  ;;  %vm303_vm7 = vweird.f32 %v1615_v56 }
 0x3d6   :  { %vm304_vm9 = vmor %vm302_vm8, %vm303_vm7  ;;  %vm764_vm8 = vcmask 1045504  }
 0x3d7   :  { %v299_v58 = vsub.f32 1.0, %v298_v57 }
 0x3d9   :  { %v300_v59 = vmul.f32 %v1615_v56, %v299_v58 }
 0x3db   :  { %v301_v60 = vadd.f32 %v1615_v56, %v300_v59 }
 0x3dd   :  { %v305_v63 = vsel %vm304_vm9, %v1615_v56, %v301_v60 }
 0x3de   :  { %v310_v2 = vsel %vm307_vm10, %v309_v0, %v305_v63 }
 0x3df   :  { %v316_v5 = vmul.f32 %v314_v4, %v310_v2 }
 0x43c   :  { %v319_v1 = vpop.permute.xlu0 %318 }
 0x43d   :  { %v321_v3 = vmul.f32 %v319_v1, %v310_v2 }
 0x43f   :  { %323 = vrot.lane.b32.xlu1 %v321_v3, %s1900_s28 }
 0x4b1   :  { %v324_v6 = vpop.permute.xlu1 %323 }
 0x4b2   :  { %v326_v7 = vadd.f32 %v324_v6, %v316_v5 }
 0x4b4   :  { %1616 = vtanh.f32 %v326_v7  ;;  %v384_v36 = vrot.slane %v326_v7, 6 }
 0x4ba   :  { %v1617_v8 = vpop.eup %1616 }
 0x4bb   :  { %329 = vrot.lane.b32.xlu2 %v1617_v8, %s1900_s28 }
 0x515   :  { %v330_v9 = vpop.permute.xlu2 %329 }
 0x516   :  { %v332_v10 = vmul.f32 %v330_v9, %v310_v2 }
 0x518   :  { %v334_v11 = vrot.slane %v332_v10, 2  ;;  %v761_v44 = vsel %vm760_vm15, %v2074_v47, %v332_v10 }
 0x51a   :  { %335 = vrot.lane.b32.xlu0 %v334_v11, %s1901_s8 }
 0x58c   :  { %v336_v12 = vpop.permute.xlu0 %335 }
 0x58d   :  { %1546 = vmatmul.msk.f32.vlgmr.msra.gmra.mxu2 %vm167_vm0, %v336_v12 }
 0x610   :  { %v356_v14 = vpop.f32.mrf.mxu2 }
 0x611   :  { %v360_v16 = vrot.slane %v356_v14, 4 }
 0x613   :  { %v362_v17 = vadd.f32 %v360_v16, %v2068_v23 }
 0x615   :  { %1618 = vtanh.f32 %v362_v17  ;;  %v1547_v19 = vmul.f32 -1.442695, %v362_v17 }
 0x617   :  { %1620 = vpow2.f32 %v1547_v19 }
 0x61b   :  { %v1619_v18 = vpop.eup %1618 }
 0x61c   :  { %388 = vrot.lane.b32.xlu1 %v1619_v18, %s1900_s28 }
 0x61d   :  { %v1621_v21 = vpop.eup %1620 }
 0x61e   :  { %v366_v22 = vadd.f32 1.0, %v1621_v21 }
 0x620   :  { %1622 = vrcp.f32 %v366_v22  ;;  %v378_v29 = vand.u32 2147483648, %v366_v22  ;;  %vm372_vm12 = vweird.f32 %v366_v22  ;;  %v376_v30 = vand.u32 2147483647, %v366_v22 }
 0x622   :  { %v379_v32 = vor.u32 1.1754944e-38, %v378_v29  ;;  %vm377_vm14 = vcmp.eq.f32.partialorder %v376_v30, 8.507059e+37 }
 0x626   :  { %v1623_v24 = vpop.eup %1622 }
 0x627   :  { %v368_v25 = vmul.f32 %v1623_v24, %v366_v22  ;;  %vm373_vm11 = vweird.f32 %v1623_v24 }
 0x628   :  { %vm374_vm13 = vmor %vm372_vm12, %vm373_vm11 }
 0x629   :  { %v369_v26 = vsub.f32 1.0, %v368_v25 }
 0x62b   :  { %v370_v27 = vmul.f32 %v1623_v24, %v369_v26 }
 0x62d   :  { %v371_v28 = vadd.f32 %v1623_v24, %v370_v27 }
 0x62f   :  { %v375_v31 = vsel %vm374_vm13, %v1623_v24, %v371_v28 }
 0x630   :  { %v380_v34 = vsel %vm377_vm14, %v379_v32, %v375_v31 }
 0x631   :  { %v386_v37 = vmul.f32 %v384_v36, %v380_v34  ;;  %v772_v36 = vld [vmem:[%s2375_s5 + $0x18] sm:$0xff] }
 0x632   :  { %803 = vmatpush.msra.mxu0 %v772_v36 }
 0x68e   :  { %v389_v33 = vpop.permute.xlu1 %388 }
 0x68f   :  { %v391_v35 = vmul.f32 %v389_v33, %v380_v34 }
 0x691   :  { %393 = vrot.lane.b32.xlu2 %v391_v35, %s1900_s28 }
 0x6eb   :  { %v394_v38 = vpop.permute.xlu2 %393 }
 0x6ec   :  { %v396_v39 = vadd.f32 %v394_v38, %v386_v37  ;;  %v771_v37 = vld [vmem:[%s2375_s5 + $0x10] sm:$0xff]  ;;  %v770_v38 = vld [vmem:[%s2375_s5 + $0x8] sm:$0xff] }
 0x6ed   :  { %804 = vmatpush.msra.mxu0 %v771_v37 }
 0x6ee   :  { %1624 = vtanh.f32 %v396_v39  ;;  %v454_v3 = vrot.slane %v396_v39, 6  ;;  %v769_v39 = vld [vmem:[%s2375_s5] sm:$0xff] }
 0x6ef   :  { %805 = vmatpush.msra.mxu0 %v770_v38 }
 0x6f1   :  { %806 = vmatpush.msra.mxu0 %v769_v39 }
 0x6f4   :  { %v1625_v40 = vpop.eup %1624 }
 0x6f5   :  { %399 = vrot.lane.b32.xlu0 %v1625_v40, %s1900_s28 }
 0x6fd   :  { %115 = vperm.xlu0 %1598, %v108_v41  }
 0x767   :  { %v400_v42 = vpop.permute.xlu0 %399 }
 0x768   :  { %v402_v43 = vmul.f32 %v400_v42, %v380_v34 }
 0x76a   :  { %v404_v45 = vrot.slane %v402_v43, 4  ;;  %v763_v46 = vsel %vm762_vm2, %v761_v44, %v402_v43 }
 0x76c   :  { %405 = vrot.lane.b32.xlu1 %v404_v45, %s1901_s8 }
 0x76f   :  { %v116_v48 = vpop.permute.xlu0 %115 }
 0x770   :  { %vm118_vm3 = vcmp.eq.s32.totalorder %v116_v48, %v2045_v13 }
 0x771   :  { %v1537_v49 = vsel %vm118_vm3, 1.0, %v1899_v15 }
 0x772   :  { %1539 = vmatmul.msk.f32.gmra.mxu0 %vm125_vm1, %v1537_v49  ;;  %v2140_v49 = vld [vmem:[#allocation7 + $0x18] sm:$0xff] }
 0x773   :  { %833 = vmatpush.msra.mxu1 %v2140_v49  ;;  %900 = vmatpush.msra.mxu2 %v2140_v49 }
 0x7de   :  { %v406_v50 = vpop.permute.xlu1 %405 }
 0x7df   :  { %1548 = vmatmul.msk.f32.vlgmr.msra.gmra.mxu3 %vm167_vm0, %v406_v50  ;;  %v2142_v50 = vld [vmem:[#allocation7 + $0x10] sm:$0xff] }
 0x7e0   :  { %970 = vmatpush.msra.mxu3 %v2140_v49  ;;  %834 = vmatpush.msra.mxu1 %v2142_v50 }
 0x7e1   :  { %901 = vmatpush.msra.mxu2 %v2142_v50 }
 0x7e2   :  { %971 = vmatpush.msra.mxu3 %v2142_v50 }
 0x7ef   :  { %v152_v51 = vpop.f32.mrf.mxu0 }
 0x7f0   :  { %1541 = vmatmul.msk.f32.gmra.mxu1 %vm167_vm0, %v152_v51  ;;  %v2146_v51 = vld [vmem:[#allocation7 + $0x8] sm:$0xff] }
 0x7f1   :  { %835 = vmatpush.msra.mxu1 %v2146_v51  ;;  %902 = vmatpush.msra.mxu2 %v2146_v51 }
 0x7f2   :  { %972 = vmatpush.msra.mxu3 %v2146_v51 }
 0x862   :  { %v426_v52 = vpop.f32.mrf.mxu3 }
 0x863   :  { %v430_v47 = vrot.slane %v426_v52, 2  ;;  %v2152_v52 = vld [vmem:[#allocation7] sm:$0xff] }
 0x864   :  { %836 = vmatpush.msra.mxu1 %v2152_v52  ;;  %903 = vmatpush.msra.mxu2 %v2152_v52 }
 0x865   :  { %v432_v53 = vadd.f32 %v430_v47, %v2068_v23  ;;  %973 = vmatpush.msra.mxu3 %v2152_v52 }
 0x867   :  { %1626 = vtanh.f32 %v432_v53  ;;  %v1549_v55 = vmul.f32 -1.442695, %v432_v53  ;;  %v1560_v53 = vld [vmem:[%s2372_s2 + $0x2] sm:$0x3] }
 0x869   :  { %1628 = vpow2.f32 %v1549_v55 }
 0x86d   :  { %v1627_v54 = vpop.eup %1626  ;;  %v194_v14 = vpop.f32.mrf.mxu1 }
 0x86e   :  { %458 = vrot.lane.b32.xlu2 %v1627_v54, %s1900_s28  ;;  %v2113_v16 = vadd.f32 %v2065_v20, %v194_v14 }
 0x86f   :  { %v1629_v13 = vpop.eup %1628 }
 0x870   :  { %v436_v15 = vadd.f32 1.0, %v1629_v13  ;;  %v2180_v13 = vld [vmem:[%s2379_s9] ss:$0 sm:$0xff] }
 0x872   :  { %1630 = vrcp.f32 %v436_v15  ;;  %v448_v61 = vand.u32 2147483648, %v436_v15  ;;  %vm442_vm5 = vweird.f32 %v436_v15  ;;  %v446_v62 = vand.u32 2147483647, %v436_v15 }
 0x874   :  { %v449_v63 = vor.u32 1.1754944e-38, %v448_v61  ;;  %vm447_vm7 = vcmp.eq.f32.partialorder %v446_v62, 8.507059e+37  ;;  %v1561_v62 = vld [vmem:[%s2373_s3 + $0x2] sm:$0x3] }
 0x878   :  { %v1631_v56 = vpop.eup %1630 }
 0x879   :  { %v438_v57 = vmul.f32 %v1631_v56, %v436_v15  ;;  %vm443_vm4 = vweird.f32 %v1631_v56 }
 0x87a   :  { %vm444_vm6 = vmor %vm442_vm5, %vm443_vm4 }
 0x87b   :  { %v439_v58 = vsub.f32 1.0, %v438_v57 }
 0x87d   :  { %v440_v59 = vmul.f32 %v1631_v56, %v439_v58 }
 0x87f   :  { %v441_v60 = vadd.f32 %v1631_v56, %v440_v59 }
 0x881   :  { %v445_v23 = vsel %vm444_vm6, %v1631_v56, %v441_v60 }
 0x882   :  { %v450_v1 = vsel %vm447_vm7, %v449_v63, %v445_v23 }
 0x883   :  { %v456_v4 = vmul.f32 %v454_v3, %v450_v1 }
 0x8c8   :  { %v459_v0 = vpop.permute.xlu2 %458 }
 0x8c9   :  { %v461_v2 = vmul.f32 %v459_v0, %v450_v1 }
 0x8cb   :  { %463 = vrot.lane.b32.xlu1 %v461_v2, %s1900_s28 }
 0x93d   :  { %v464_v5 = vpop.permute.xlu1 %463 }
 0x93e   :  { %v466_v6 = vadd.f32 %v464_v5, %v456_v4 }
 0x940   :  { %1632 = vtanh.f32 %v466_v6  ;;  %v521_v40 = vrot.slane %v466_v6, 6 }
 0x946   :  { %v1633_v7 = vpop.eup %1632 }
 0x947   :  { %469 = vrot.lane.b32.xlu2 %v1633_v7, %s1900_s28 }
 0x9a1   :  { %v470_v8 = vpop.permute.xlu2 %469 }
 0x9a2   :  { %v472_v9 = vmul.f32 %v470_v8, %v450_v1 }
 0x9a4   :  { %v474_v10 = vrot.slane %v472_v9, 6  ;;  %v765_v11 = vsel %vm764_vm8, %v763_v46, %v472_v9 }
 0x9a6   :  { %475 = vrot.lane.b32.xlu0 %v474_v10, %s1901_s8 }
 0xa18   :  { %v476_v12 = vpop.permute.xlu0 %475 }
 0xa19   :  { %1550 = vmatmul.msk.f32.vlgmr.msrb.gmra.mxu0 %vm167_vm0, %v476_v12 }
 0xa1a   :  { %1246 = vmatpush.msrb.mxu0 %v2140_v49 }
 0xa1c   :  { %1247 = vmatpush.msrb.mxu0 %v2142_v50 }
 0xa1e   :  { %1248 = vmatpush.msrb.mxu0 %v2146_v51 }
 0xa20   :  { %1249 = vmatpush.msrb.mxu0 %v2152_v52 }
 0xa96   :  { %v496_v17 = vpop.f32.mrf.mxu0 }
 0xa97   :  { %v499_v18 = vadd.f32 %v496_v17, %v2113_v16 }
 0xa99   :  { %1634 = vtanh.f32 %v499_v18  ;;  %v1551_v21 = vmul.f32 -1.442695, %v499_v18 }
 0xa9b   :  { %1636 = vpow2.f32 %v1551_v21 }
 0xa9f   :  { %v1635_v19 = vpop.eup %1634 }
 0xaa0   :  { %525 = vrot.lane.b32.xlu1 %v1635_v19, %s1900_s28 }
 0xaa1   :  { %v1637_v22 = vpop.eup %1636 }
 0xaa2   :  { %v503_v24 = vadd.f32 1.0, %v1637_v22 }
 0xaa4   :  { %1638 = vrcp.f32 %v503_v24  ;;  %v515_v20 = vand.u32 2147483648, %v503_v24  ;;  %vm509_vm10 = vweird.f32 %v503_v24  ;;  %v513_v30 = vand.u32 2147483647, %v503_v24 }
 0xaa6   :  { %v516_v32 = vor.u32 1.1754944e-38, %v515_v20  ;;  %vm514_vm12 = vcmp.eq.f32.partialorder %v513_v30, 8.507059e+37 }
 0xaaa   :  { %v1639_v25 = vpop.eup %1638 }
 0xaab   :  { %v505_v26 = vmul.f32 %v1639_v25, %v503_v24  ;;  %vm510_vm9 = vweird.f32 %v1639_v25 }
 0xaac   :  { %vm511_vm11 = vmor %vm509_vm10, %vm510_vm9 }
 0xaad   :  { %v506_v27 = vsub.f32 1.0, %v505_v26 }
 0xaaf   :  { %v507_v28 = vmul.f32 %v1639_v25, %v506_v27 }
 0xab1   :  { %v508_v29 = vadd.f32 %v1639_v25, %v507_v28 }
 0xab3   :  { %v512_v31 = vsel %vm511_vm11, %v1639_v25, %v508_v29 }
 0xab4   :  { %v517_v34 = vsel %vm514_vm12, %v516_v32, %v512_v31 }
 0xab5   :  { %v523_v41 = vmul.f32 %v521_v40, %v517_v34 }
 0xb12   :  { %v526_v33 = vpop.permute.xlu1 %525 }
 0xb13   :  { %v528_v35 = vmul.f32 %v526_v33, %v517_v34 }
 0xb15   :  { %530 = vrot.lane.b32.xlu2 %v528_v35, %s1900_s28 }
 0xb1d   :  { %783 = vrot.lane.b32.xlu2 %v765_v11, %s1901_s8 }
 0xb6f   :  { %v531_v42 = vpop.permute.xlu2 %530 }
 0xb70   :  { %v2131_v43 = vadd.f32 %v531_v42, %v523_v41 }
 0xb72   :  { %1640 = vtanh.f32 %v2131_v43  ;;  %v590_v32 = vrot.slane %v2131_v43, 6 }
 0xb77   :  { %v784_v44 = vpop.permute.xlu2 %783 }
 0xb78   :  { %v1641_v45 = vpop.eup %1640  ;;  %1558 = vmatmul.msk.f32.vlgmr.msra.gmra.mxu0 %vm167_vm0, %v784_v44 }
 0xb79   :  { %536 = vrot.lane.b32.xlu0 %v1641_v45, %s1900_s28 }
 0xbeb   :  { %v537_v46 = vpop.permute.xlu0 %536 }
 0xbec   :  { %v2136_v48 = vmul.f32 %v537_v46, %v517_v34 }
 0xbee   :  { %541 = vrot.lane.b32.xlu1 %v2136_v48, %s1901_s8 }
 0xbf5   :  { %v808_v56 = vpop.f32.mrf.mxu0 }
 0xbf6   :  { %v2184_v57 = vadd.f32 %v2180_v13, %v808_v56 }
 0xc60   :  { %v542_v47 = vpop.permute.xlu1 %541 }
 0xc61   :  { %1552 = vmatmul.msk.f32.vlgmr.msrb.gmra.mxu1 %vm167_vm0, %v542_v47 }
 0xc62   :  { %1040 = vmatpush.msrb.mxu1 %v2140_v49 }
 0xc64   :  { %1041 = vmatpush.msrb.mxu1 %v2142_v50 }
 0xc66   :  { %1042 = vmatpush.msrb.mxu1 %v2146_v51 }
 0xc68   :  { %1043 = vmatpush.msrb.mxu1 %v2152_v52 }
 0xc69   :  { %1562 = vmatmul.msk.f32.vlgmr.msra.gmra.mxu1 %vm167_vm0, %v1560_v53 }
 0xc6a   :  { %1316 = vmatpush.msra.mxu1 %v2140_v49 }
 0xc6c   :  { %1317 = vmatpush.msra.mxu1 %v2142_v50 }
 0xc6e   :  { %1318 = vmatpush.msra.mxu1 %v2146_v51 }
 0xc70   :  { %1319 = vmatpush.msra.mxu1 %v2152_v52 }
 0xcde   :  { %v562_v54 = vpop.f32.mrf.mxu1 }
 0xcdf   :  { %v566_v55 = vrot.slane %v562_v54, 6 }
 0xce1   :  { %v568_v15 = vadd.f32 %v566_v55, %v2113_v16 }
 0xce3   :  { %1642 = vtanh.f32 %v568_v15  ;;  %v1553_v23 = vmul.f32 -1.442695, %v568_v15 }
 0xce6   :  { %v838_v58 = vpop.f32.mrf.mxu1 }
 0xce7   :  { %v841_v59 = vadd.f32 %v838_v58, %v2184_v57 }
 0xce9   :  { %v1643_v60 = vpop.eup %1642  ;;  %1644 = vtanh.f32 %v841_v59  ;;  %v1563_v63 = vmul.f32 -1.442695, %v841_v59 }
 0xcea   :  { %594 = vrot.lane.b32.xlu0 %v1643_v60, %s1900_s28  ;;  %1646 = vpow2.f32 %v1553_v23 }
 0xceb   :  { %1648 = vpow2.f32 %v1563_v63 }
 0xcef   :  { %v1645_v61 = vpop.eup %1644 }
 0xcf0   :  { %868 = vrot.lane.b32.xlu1 %v1645_v61, %s1900_s28  ;;  %v1647_v0 = vpop.eup %1646 }
 0xcf1   :  { %v572_v1 = vadd.f32 1.0, %v1647_v0  ;;  %v1649_v2 = vpop.eup %1648 }
 0xcf2   :  { %863 = vrot.lane.b32.xlu0 %v1561_v62, %s1900_s28  ;;  %v845_v3 = vadd.f32 1.0, %v1649_v2 }
 0xcf3   :  { %1650 = vrcp.f32 %v572_v1  ;;  %v584_v12 = vand.u32 2147483648, %v572_v1  ;;  %vm578_vm14 = vweird.f32 %v572_v1  ;;  %v582_v14 = vand.u32 2147483647, %v572_v1 }
 0xcf4   :  { %1652 = vrcp.f32 %v845_v3  ;;  %v857_v25 = vand.u32 2147483648, %v845_v3  ;;  %vm851_vm6 = vweird.f32 %v845_v3  ;;  %v855_v27 = vand.u32 2147483647, %v845_v3 }
 0xcf5   :  { %v585_v19 = vor.u32 1.1754944e-38, %v584_v12  ;;  %vm583_vm4 = vcmp.eq.f32.partialorder %v582_v14, 8.507059e+37 }
 0xcf6   :  { %v858_v29 = vor.u32 1.1754944e-38, %v857_v25  ;;  %vm856_vm9 = vcmp.eq.f32.partialorder %v855_v27, 8.507059e+37 }
 0xcf9   :  { %v1651_v4 = vpop.eup %1650 }
 0xcfa   :  { %v574_v5 = vmul.f32 %v1651_v4, %v572_v1  ;;  %v1653_v6 = vpop.eup %1652  ;;  %vm579_vm13 = vweird.f32 %v1651_v4 }
 0xcfb   :  { %v847_v8 = vmul.f32 %v1653_v6, %v845_v3  ;;  %vm580_vm3 = vmor %vm578_vm14, %vm579_vm13  ;;  %vm852_vm5 = vweird.f32 %v1653_v6 }
 0xcfc   :  { %v575_v7 = vsub.f32 1.0, %v574_v5  ;;  %vm853_vm7 = vmor %vm851_vm6, %vm852_vm5 }
 0xcfd   :  { %v848_v10 = vsub.f32 1.0, %v847_v8 }
 0xcfe   :  { %v576_v9 = vmul.f32 %v1651_v4, %v575_v7 }
 0xcff   :  { %v849_v17 = vmul.f32 %v1653_v6, %v848_v10 }
 0xd00   :  { %v577_v11 = vadd.f32 %v1651_v4, %v576_v9 }
 0xd01   :  { %v850_v21 = vadd.f32 %v1653_v6, %v849_v17 }
 0xd02   :  { %v581_v18 = vsel %vm580_vm3, %v1651_v4, %v577_v11 }
 0xd03   :  { %v586_v24 = vsel %vm583_vm4, %v585_v19, %v581_v18  ;;  %v854_v28 = vsel %vm853_vm7, %v1653_v6, %v850_v21 }
 0xd04   :  { %v859_v30 = vsel %vm856_vm9, %v858_v29, %v854_v28  ;;  %v592_v33 = vmul.f32 %v590_v32, %v586_v24 }
 0xd5c   :  { %v595_v22 = vpop.permute.xlu0 %594 }
 0xd5d   :  { %v597_v26 = vmul.f32 %v595_v22, %v586_v24 }
 0xd5f   :  { %599 = vrot.lane.b32.xlu2 %v597_v26, %s1900_s28 }
 0xd62   :  { %v869_v20 = vpop.permute.xlu1 %868 }
 0xd63   :  { %v871_v31 = vmul.f32 %v869_v20, %v859_v30 }
 0xd64   :  { %v864_v37 = vpop.permute.xlu0 %863 }
 0xd65   :  { %873 = vrot.lane.b32.xlu1 %v871_v31, %s1900_s28  ;;  %v866_v38 = vmul.f32 %v864_v37, %v859_v30 }
 0xdb9   :  { %v600_v34 = vpop.permute.xlu2 %599 }
 0xdba   :  { %v2196_v35 = vadd.f32 %v600_v34, %v592_v33 }
 0xdbc   :  { %1654 = vtanh.f32 %v2196_v35  ;;  %v660_v31 = vrot.slane %v2196_v35, 6 }
 0xdc2   :  { %v1655_v36 = vpop.eup %1654 }
 0xdc3   :  { %605 = vrot.lane.b32.xlu2 %v1655_v36, %s1900_s28 }
 0xdd7   :  { %v874_v39 = vpop.permute.xlu1 %873 }
 0xdd8   :  { %v2200_v40 = vadd.f32 %v874_v39, %v866_v38 }
 0xdda   :  { %1656 = vtanh.f32 %v2200_v40  ;;  %v933_v37 = vrot.slane %v2200_v40, 6 }
 0xde0   :  { %v1657_v41 = vpop.eup %1656 }
 0xde1   :  { %879 = vrot.lane.b32.xlu0 %v1657_v41, %s1900_s28 }
 0xe1d   :  { %v606_v42 = vpop.permute.xlu2 %605 }
 0xe1e   :  { %v2204_v43 = vmul.f32 %v606_v42, %v586_v24 }
 0xe20   :  { %v610_v44 = vrot.slane %v2204_v43, 2 }
 0xe22   :  { %611 = vrot.lane.b32.xlu1 %v610_v44, %s1901_s8 }
 0xe53   :  { %v880_v45 = vpop.permute.xlu0 %879 }
 0xe54   :  { %v2208_v46 = vmul.f32 %v880_v45, %v859_v30  ;;  %v766_v45 = vsel %vm760_vm15, %v2136_v48, %v2204_v43 }
 0xe56   :  { %884 = vrot.lane.b32.xlu2 %v2208_v46, %s1901_s8 }
 0xe94   :  { %v612_v47 = vpop.permute.xlu1 %611 }
 0xe95   :  { %1554 = vmatmul.msk.f32.vlgmr.msrb.gmra.mxu2 %vm167_vm0, %v612_v47 }
 0xe96   :  { %1110 = vmatpush.msrb.mxu2 %v2140_v49 }
 0xe98   :  { %1111 = vmatpush.msrb.mxu2 %v2142_v50 }
 0xe9a   :  { %1112 = vmatpush.msrb.mxu2 %v2146_v51 }
 0xe9c   :  { %1113 = vmatpush.msrb.mxu2 %v2152_v52 }
 0xeb0   :  { %v885_v53 = vpop.permute.xlu2 %884 }
 0xeb1   :  { %1564 = vmatmul.msk.f32.vlgmr.msra.gmra.mxu2 %vm167_vm0, %v885_v53 }
 0xf18   :  { %v632_v54 = vpop.f32.mrf.mxu2 }
 0xf19   :  { %v636_v55 = vrot.slane %v632_v54, 4 }
 0xf1b   :  { %v638_v15 = vadd.f32 %v636_v55, %v2113_v16 }
 0xf1d   :  { %1658 = vtanh.f32 %v638_v15  ;;  %v1555_v62 = vmul.f32 -1.442695, %v638_v15 }
 0xf23   :  { %v1659_v56 = vpop.eup %1658 }
 0xf24   :  { %664 = vrot.lane.b32.xlu0 %v1659_v56, %s1900_s28 }
 0xf34   :  { %v905_v58 = vpop.f32.mrf.mxu2 }
 0xf35   :  { %v909_v59 = vrot.slane %v905_v58, 6 }
 0xf37   :  { %v911_v60 = vadd.f32 %v909_v59, %v2184_v57 }
 0xf39   :  { %1660 = vtanh.f32 %v911_v60  ;;  %v1565_v2 = vmul.f32 -1.442695, %v911_v60 }
 0xf3a   :  { %1662 = vpow2.f32 %v1555_v62 }
 0xf3f   :  { %v1661_v61 = vpop.eup %1660 }
 0xf40   :  { %937 = vrot.lane.b32.xlu1 %v1661_v61, %s1900_s28  ;;  %v1663_v23 = vpop.eup %1662 }
 0xf41   :  { %v642_v63 = vadd.f32 1.0, %v1663_v23 }
 0xf43   :  { %1664 = vrcp.f32 %v642_v63  ;;  %v654_v7 = vand.u32 2147483648, %v642_v63  ;;  %vm648_vm11 = vweird.f32 %v642_v63  ;;  %v652_v8 = vand.u32 2147483647, %v642_v63 }
 0xf44   :  { %1666 = vpow2.f32 %v1565_v2 }
 0xf45   :  { %v655_v11 = vor.u32 1.1754944e-38, %v654_v7  ;;  %vm653_vm13 = vcmp.eq.f32.partialorder %v652_v8, 8.507059e+37 }
 0xf49   :  { %v1665_v0 = vpop.eup %1664 }
 0xf4a   :  { %v644_v1 = vmul.f32 %v1665_v0, %v642_v63  ;;  %v1667_v5 = vpop.eup %1666  ;;  %vm649_vm10 = vweird.f32 %v1665_v0 }
 0xf4b   :  { %v915_v9 = vadd.f32 1.0, %v1667_v5  ;;  %vm650_vm12 = vmor %vm648_vm11, %vm649_vm10 }
 0xf4c   :  { %v645_v3 = vsub.f32 1.0, %v644_v1 }
 0xf4d   :  { %1668 = vrcp.f32 %v915_v9  ;;  %v927_v25 = vand.u32 2147483648, %v915_v9  ;;  %vm921_vm3 = vweird.f32 %v915_v9  ;;  %v925_v26 = vand.u32 2147483647, %v915_v9 }
 0xf4e   :  { %v646_v4 = vmul.f32 %v1665_v0, %v645_v3 }
 0xf4f   :  { %v928_v28 = vor.u32 1.1754944e-38, %v927_v25  ;;  %vm926_vm5 = vcmp.eq.f32.partialorder %v925_v26, 8.507059e+37 }
 0xf50   :  { %v647_v6 = vadd.f32 %v1665_v0, %v646_v4 }
 0xf52   :  { %v651_v10 = vsel %vm650_vm12, %v1665_v0, %v647_v6 }
 0xf53   :  { %v656_v14 = vsel %vm653_vm13, %v655_v11, %v651_v10  ;;  %v1669_v18 = vpop.eup %1668 }
 0xf54   :  { %v917_v19 = vmul.f32 %v1669_v18, %v915_v9  ;;  %vm922_vm14 = vweird.f32 %v1669_v18  ;;  %v662_v32 = vmul.f32 %v660_v31, %v656_v14 }
 0xf55   :  { %vm923_vm4 = vmor %vm921_vm3, %vm922_vm14 }
 0xf56   :  { %v918_v21 = vsub.f32 1.0, %v917_v19 }
 0xf58   :  { %v919_v22 = vmul.f32 %v1669_v18, %v918_v21 }
 0xf5a   :  { %v920_v24 = vadd.f32 %v1669_v18, %v919_v22 }
 0xf5c   :  { %v924_v27 = vsel %vm923_vm4, %v1669_v18, %v920_v24 }
 0xf5d   :  { %v929_v20 = vsel %vm926_vm5, %v928_v28, %v924_v27 }
 0xf5e   :  { %v935_v38 = vmul.f32 %v933_v37, %v929_v20 }
 0xf96   :  { %v665_v12 = vpop.permute.xlu0 %664 }
 0xf97   :  { %v667_v17 = vmul.f32 %v665_v12, %v656_v14 }
 0xf99   :  { %669 = vrot.lane.b32.xlu2 %v667_v17, %s1900_s28 }
 0xfb2   :  { %v938_v29 = vpop.permute.xlu1 %937 }
 0xfb3   :  { %v940_v30 = vmul.f32 %v938_v29, %v929_v20 }
 0xfb5   :  { %942 = vrot.lane.b32.xlu0 %v940_v30, %s1900_s28 }
 0xff3   :  { %v670_v33 = vpop.permute.xlu2 %669 }
 0xff4   :  { %v2225_v34 = vadd.f32 %v670_v33, %v662_v32 }
 0xff6   :  { %1670 = vtanh.f32 %v2225_v34 }
 0xffc   :  { %v1671_v36 = vpop.eup %1670 }
 0xffd   :  { %675 = vrot.lane.b32.xlu1 %v1671_v36, %s1900_s28 }
0x1027   :  { %v943_v39 = vpop.permute.xlu0 %942 }
0x1028   :  { %v945_v41 = vadd.f32 %v943_v39, %v935_v38 }
0x102a   :  { %1672 = vtanh.f32 %v945_v41  ;;  %v1003_v7 = vrot.slane %v945_v41, 6 }
0x1030   :  { %v1673_v42 = vpop.eup %1672 }
0x1031   :  { %948 = vrot.lane.b32.xlu2 %v1673_v42, %s1900_s28 }
0x106f   :  { %v676_v44 = vpop.permute.xlu1 %675 }
0x1070   :  { %v678_v35 = vmul.f32 %v676_v44, %v656_v14 }
0x1072   :  { %v680_v47 = vrot.slane %v678_v35, 4  ;;  %v2235_v53 = vsel %vm762_vm2, %v766_v45, %v678_v35 }
0x1074   :  { %681 = vrot.lane.b32.xlu0 %v680_v47, %s1901_s8 }
0x108b   :  { %v949_v40 = vpop.permute.xlu2 %948 }
0x108c   :  { %v951_v54 = vmul.f32 %v949_v40, %v929_v20 }
0x108e   :  { %v953_v55 = vrot.slane %v951_v54, 2  ;;  %v1380_v21 = vsel %vm760_vm15, %v2208_v46, %v951_v54 }
0x1090   :  { %954 = vrot.lane.b32.xlu1 %v953_v55, %s1901_s8 }
0x10e6   :  { %v682_v15 = vpop.permute.xlu0 %681 }
0x10e7   :  { %1556 = vmatmul.msk.f32.vlgmr.msrb.gmra.mxu3 %vm167_vm0, %v682_v15 }
0x10e8   :  { %1176 = vmatpush.msrb.mxu3 %v2140_v49 }
0x10ea   :  { %1177 = vmatpush.msrb.mxu3 %v2142_v50 }
0x10ec   :  { %1178 = vmatpush.msrb.mxu3 %v2146_v51 }
0x10ee   :  { %1179 = vmatpush.msrb.mxu3 %v2152_v52 }
0x1102   :  { %v955_v48 = vpop.permute.xlu1 %954 }
0x1103   :  { %1566 = vmatmul.msk.f32.vlgmr.msra.gmra.mxu3 %vm167_vm0, %v955_v48 }
0x116a   :  { %v702_v43 = vpop.f32.mrf.mxu3 }
0x116b   :  { %v706_v11 = vrot.slane %v702_v43, 2 }
0x116d   :  { %v708_v12 = vadd.f32 %v706_v11, %v2113_v16 }
0x116f   :  { %v1557_v16 = vmul.f32 -1.442695, %v708_v12 }
0x1186   :  { %v975_v56 = vpop.f32.mrf.mxu3 }
0x1187   :  { %v979_v58 = vrot.slane %v975_v56, 4 }
0x1189   :  { %v981_v59 = vadd.f32 %v979_v58, %v2184_v57 }
0x118b   :  { %1674 = vtanh.f32 %v981_v59  ;;  %v1567_v61 = vmul.f32 -1.442695, %v981_v59 }
0x118d   :  { %1676 = vpow2.f32 %v1567_v61 }
0x1191   :  { %v1675_v60 = vpop.eup %1674 }
0x1192   :  { %1007 = vrot.lane.b32.xlu2 %v1675_v60, %s1900_s28 }
0x1193   :  { %v1677_v49 = vpop.eup %1676 }
0x1194   :  { %v985_v50 = vadd.f32 1.0, %v1677_v49 }
0x1196   :  { %1678 = vrcp.f32 %v985_v50  ;;  %v997_v0 = vand.u32 2147483648, %v985_v50  ;;  %vm991_vm7 = vweird.f32 %v985_v50  ;;  %v995_v1 = vand.u32 2147483647, %v985_v50 }
0x1198   :  { %v998_v3 = vor.u32 1.1754944e-38, %v997_v0  ;;  %vm996_vm10 = vcmp.eq.f32.partialorder %v995_v1, 8.507059e+37 }
0x119c   :  { %v1679_v51 = vpop.eup %1678 }
0x119d   :  { %v987_v62 = vmul.f32 %v1679_v51, %v985_v50  ;;  %vm992_vm6 = vweird.f32 %v1679_v51  ;;  %v730_v50 = vrot.slane %v2225_v34, 6 }
0x119e   :  { %vm993_vm9 = vmor %vm991_vm7, %vm992_vm6 }
0x119f   :  { %v988_v52 = vsub.f32 1.0, %v987_v62 }
0x11a1   :  { %v989_v23 = vmul.f32 %v1679_v51, %v988_v52 }
0x11a3   :  { %v990_v63 = vadd.f32 %v1679_v51, %v989_v23 }
0x11a5   :  { %v994_v2 = vsel %vm993_vm9, %v1679_v51, %v990_v63 }
0x11a6   :  { %v999_v5 = vsel %vm996_vm10, %v998_v3, %v994_v2 }
0x11a7   :  { %v1005_v8 = vmul.f32 %v1003_v7, %v999_v5 }
0x11ec   :  { %v1008_v4 = vpop.permute.xlu2 %1007 }
0x11ed   :  { %v1010_v6 = vmul.f32 %v1008_v4, %v999_v5 }
0x11ef   :  { %1012 = vrot.lane.b32.xlu0 %v1010_v6, %s1900_s28 }
0x1261   :  { %v1013_v9 = vpop.permute.xlu0 %1012 }
0x1262   :  { %v2248_v10 = vadd.f32 %v1013_v9, %v1005_v8 }
0x1264   :  { %1680 = vtanh.f32 %v2248_v10  ;;  %v1073_v63 = vrot.slane %v2248_v10, 6 }
0x1265   :  { %1682 = vtanh.f32 %v708_v12 }
0x1266   :  { %1684 = vpow2.f32 %v1557_v16 }
0x126a   :  { %v1681_v14 = vpop.eup %1680 }
0x126b   :  { %1018 = vrot.lane.b32.xlu1 %v1681_v14, %s1900_s28  ;;  %v1683_v17 = vpop.eup %1682 }
0x126c   :  { %v1685_v26 = vpop.eup %1684 }
0x126d   :  { %v712_v27 = vadd.f32 1.0, %v1685_v26 }
0x126f   :  { %1686 = vrcp.f32 %v712_v27  ;;  %v724_v37 = vand.u32 2147483648, %v712_v27  ;;  %vm718_vm12 = vweird.f32 %v712_v27  ;;  %v722_v38 = vand.u32 2147483647, %v712_v27 }
0x1271   :  { %v725_v41 = vor.u32 1.1754944e-38, %v724_v37  ;;  %vm723_vm14 = vcmp.eq.f32.partialorder %v722_v38, 8.507059e+37 }
0x1273   :  { %734 = vrot.lane.b32.xlu1 %v1683_v17, %s1900_s28 }
0x1275   :  { %v1687_v28 = vpop.eup %1686 }
0x1276   :  { %v714_v29 = vmul.f32 %v1687_v28, %v712_v27  ;;  %vm719_vm11 = vweird.f32 %v1687_v28 }
0x1277   :  { %vm720_vm13 = vmor %vm718_vm12, %vm719_vm11 }
0x1278   :  { %v715_v31 = vsub.f32 1.0, %v714_v29 }
0x127a   :  { %v716_v32 = vmul.f32 %v1687_v28, %v715_v31 }
0x127c   :  { %v717_v33 = vadd.f32 %v1687_v28, %v716_v32 }
0x127e   :  { %v721_v39 = vsel %vm720_vm13, %v1687_v28, %v717_v33 }
0x127f   :  { %v726_v44 = vsel %vm723_vm14, %v725_v41, %v721_v39 }
0x1280   :  { %v732_v51 = vmul.f32 %v730_v50, %v726_v44 }
0x12dd   :  { %v1019_v18 = vpop.permute.xlu1 %1018 }
0x12de   :  { %v1021_v19 = vmul.f32 %v1019_v18, %v999_v5 }
0x12e0   :  { %v1023_v22 = vrot.slane %v1021_v19, 4  ;;  %v2257_v24 = vsel %vm762_vm2, %v1380_v21, %v1021_v19 }
0x12e2   :  { %1024 = vrot.lane.b32.xlu2 %v1023_v22, %s1901_s8 }
0x12e5   :  { %v735_v42 = vpop.permute.xlu1 %734 }
0x12e6   :  { %v737_v35 = vmul.f32 %v735_v42, %v726_v44 }
0x133c   :  { %v1025_v25 = vpop.permute.xlu2 %1024 }
0x133d   :  { %1568 = vmatmul.msk.f32.vlgmr.msrb.gmra.mxu1 %vm167_vm0, %v1025_v25 }
0x13ba   :  { %v1045_v20 = vpop.f32.mrf.mxu1 }
0x13bb   :  { %v1049_v30 = vrot.slane %v1045_v20, 2 }
0x13bd   :  { %v1051_v46 = vadd.f32 %v1049_v30, %v2184_v57 }
0x13bf   :  { %1688 = vtanh.f32 %v1051_v46  ;;  %v1569_v57 = vmul.f32 -1.442695, %v1051_v46 }
0x13c1   :  { %1690 = vpow2.f32 %v1569_v57 }
0x13c5   :  { %v1689_v36 = vpop.eup %1688 }
0x13c6   :  { %1077 = vrot.lane.b32.xlu0 %v1689_v36, %s1900_s28 }
0x13c7   :  { %v1691_v45 = vpop.eup %1690 }
0x13c8   :  { %v1055_v47 = vadd.f32 1.0, %v1691_v45 }
0x13ca   :  { %1692 = vrcp.f32 %v1055_v47  ;;  %v1067_v43 = vand.u32 2147483648, %v1055_v47  ;;  %vm1061_vm4 = vweird.f32 %v1055_v47  ;;  %v1065_v56 = vand.u32 2147483647, %v1055_v47 }
0x13cc   :  { %v1068_v59 = vor.u32 1.1754944e-38, %v1067_v43  ;;  %vm1066_vm6 = vcmp.eq.f32.partialorder %v1065_v56, 8.507059e+37 }
0x13ce   :  { %739 = vrot.lane.b32.xlu0 %v737_v35, %s1900_s28 }
0x13d0   :  { %v1693_v40 = vpop.eup %1692 }
0x13d1   :  { %v1057_v54 = vmul.f32 %v1693_v40, %v1055_v47  ;;  %vm1062_vm3 = vweird.f32 %v1693_v40 }
0x13d2   :  { %vm1063_vm5 = vmor %vm1061_vm4, %vm1062_vm3 }
0x13d3   :  { %v1058_v55 = vsub.f32 1.0, %v1057_v54 }
0x13d5   :  { %v1059_v15 = vmul.f32 %v1693_v40, %v1058_v55 }
0x13d7   :  { %v1060_v48 = vadd.f32 %v1693_v40, %v1059_v15 }
0x13d9   :  { %v1064_v58 = vsel %vm1063_vm5, %v1693_v40, %v1060_v48 }
0x13da   :  { %v1069_v61 = vsel %vm1066_vm6, %v1068_v59, %v1064_v58 }
0x13db   :  { %v1075_v0 = vmul.f32 %v1073_v63, %v1069_v61 }
0x1438   :  { %v1078_v60 = vpop.permute.xlu0 %1077 }
0x1439   :  { %v1080_v49 = vmul.f32 %v1078_v60, %v1069_v61 }
0x143b   :  { %1082 = vrot.lane.b32.xlu2 %v1080_v49, %s1900_s28 }
0x1440   :  { %v740_v62 = vpop.permute.xlu0 %739 }
0x1441   :  { %v2266_v52 = vadd.f32 %v740_v62, %v732_v51 }
0x1443   :  { %1694 = vtanh.f32 %v2266_v52 }
0x1449   :  { %v1695_v23 = vpop.eup %1694 }
0x144a   :  { %745 = vrot.lane.b32.xlu2 %v1695_v23, %s1900_s28 }
0x1495   :  { %v1083_v1 = vpop.permute.xlu2 %1082 }
0x1496   :  { %v1085_v2 = vadd.f32 %v1083_v1, %v1075_v0 }
0x1498   :  { %1696 = vtanh.f32 %v1085_v2  ;;  %v1140_v32 = vrot.slane %v1085_v2, 6 }
0x149e   :  { %v1697_v3 = vpop.eup %1696 }
0x149f   :  { %1088 = vrot.lane.b32.xlu1 %v1697_v3, %s1900_s28 }
0x14a4   :  { %v746_v4 = vpop.permute.xlu2 %745 }
0x14a5   :  { %v2272_v34 = vmul.f32 %v746_v4, %v726_v44 }
0x14a7   :  { %v768_v5 = vsel %vm764_vm8, %v2235_v53, %v2272_v34 }
0x14a8   :  { %785 = vrot.lane.b32.xlu1 %v768_v5, %s1901_s8 }
0x1511   :  { %v1089_v6 = vpop.permute.xlu1 %1088 }
0x1512   :  { %v1091_v7 = vmul.f32 %v1089_v6, %v1069_v61 }
0x1514   :  { %v1093_v8 = vrot.slane %v1091_v7, 6  ;;  %v2280_v9 = vsel %vm764_vm8, %v2257_v24, %v1091_v7 }
0x1516   :  { %1094 = vrot.lane.b32.xlu0 %v1093_v8, %s1901_s8 }
0x151a   :  { %v786_v10 = vpop.permute.xlu1 %785 }
0x151b   :  { %1559 = vmatmul.msk.f32.gmra.mxu0 %vm167_vm0, %v786_v10 }
0x1588   :  { %v1095_v11 = vpop.permute.xlu0 %1094 }
0x1589   :  { %1570 = vmatmul.msk.f32.vlgmr.msrb.gmra.mxu2 %vm167_vm0, %v1095_v11 }
0x1598   :  { %v811_v12 = vpop.f32.mrf.mxu0 }
0x1599   :  { %v2286_v53 = vadd.f32 %v2180_v13, %v811_v12 }
0x160c   :  { %v1115_v14 = vpop.f32.mrf.mxu2 }
0x160d   :  { %v1118_v17 = vadd.f32 %v1115_v14, %v2286_v53 }
0x160f   :  { %1698 = vtanh.f32 %v1118_v17  ;;  %v1571_v19 = vmul.f32 -1.442695, %v1118_v17 }
0x1611   :  { %1700 = vpow2.f32 %v1571_v19 }
0x1615   :  { %v1699_v18 = vpop.eup %1698 }
0x1616   :  { %1144 = vrot.lane.b32.xlu2 %v1699_v18, %s1900_s28 }
0x1617   :  { %v1701_v21 = vpop.eup %1700 }
0x1618   :  { %v1122_v22 = vadd.f32 1.0, %v1701_v21 }
0x161a   :  { %1702 = vrcp.f32 %v1122_v22  ;;  %v1134_v13 = vand.u32 2147483648, %v1122_v22  ;;  %vm1128_vm9 = vweird.f32 %v1122_v22  ;;  %v1132_v28 = vand.u32 2147483647, %v1122_v22 }
0x161c   :  { %v1135_v20 = vor.u32 1.1754944e-38, %v1134_v13  ;;  %vm1133_vm11 = vcmp.eq.f32.partialorder %v1132_v28, 8.507059e+37 }
0x1620   :  { %v1703_v24 = vpop.eup %1702 }
0x1621   :  { %v1124_v25 = vmul.f32 %v1703_v24, %v1122_v22  ;;  %vm1129_vm7 = vweird.f32 %v1703_v24 }
0x1622   :  { %vm1130_vm10 = vmor %vm1128_vm9, %vm1129_vm7 }
0x1623   :  { %v1125_v16 = vsub.f32 1.0, %v1124_v25 }
0x1625   :  { %v1126_v26 = vmul.f32 %v1703_v24, %v1125_v16 }
0x1627   :  { %v1127_v27 = vadd.f32 %v1703_v24, %v1126_v26 }
0x1629   :  { %v1131_v29 = vsel %vm1130_vm10, %v1703_v24, %v1127_v27 }
0x162a   :  { %v1136_v31 = vsel %vm1133_vm11, %v1135_v20, %v1131_v29  ;;  %vm1482_vm11 = vcmask 392192  }
0x162b   :  { %v1142_v33 = vmul.f32 %v1140_v32, %v1136_v31 }
0x1670   :  { %v1145_v30 = vpop.permute.xlu2 %1144 }
0x1671   :  { %v1147_v46 = vmul.f32 %v1145_v30, %v1136_v31 }
0x1673   :  { %1149 = vrot.lane.b32.xlu0 %v1147_v46, %s1900_s28 }
0x16e5   :  { %v1150_v36 = vpop.permute.xlu0 %1149 }
0x16e6   :  { %v1152_v37 = vadd.f32 %v1150_v36, %v1142_v33 }
0x16e8   :  { %1704 = vtanh.f32 %v1152_v37  ;;  %v1209_v62 = vrot.slane %v1152_v37, 6 }
0x16ee   :  { %v1705_v38 = vpop.eup %1704 }
0x16ef   :  { %1155 = vrot.lane.b32.xlu1 %v1705_v38, %s1900_s28 }
0x1761   :  { %v1156_v39 = vpop.permute.xlu1 %1155 }
0x1762   :  { %v2292_v41 = vmul.f32 %v1156_v39, %v1136_v31 }
0x1764   :  { %1160 = vrot.lane.b32.xlu2 %v2292_v41, %s1901_s8 }
0x17be   :  { %v1161_v42 = vpop.permute.xlu2 %1160 }
0x17bf   :  { %1572 = vmatmul.msk.f32.vlgmr.msrb.gmra.mxu3 %vm167_vm0, %v1161_v42 }
0x1842   :  { %v1181_v44 = vpop.f32.mrf.mxu3 }
0x1843   :  { %v1185_v35 = vrot.slane %v1181_v44, 6 }
0x1845   :  { %v1187_v57 = vadd.f32 %v1185_v35, %v2286_v53 }
0x1847   :  { %1706 = vtanh.f32 %v1187_v57  ;;  %v1573_v47 = vmul.f32 -1.442695, %v1187_v57 }
0x1849   :  { %1708 = vpow2.f32 %v1573_v47 }
0x184d   :  { %v1707_v45 = vpop.eup %1706 }
0x184e   :  { %1213 = vrot.lane.b32.xlu0 %v1707_v45, %s1900_s28 }
0x184f   :  { %v1709_v40 = vpop.eup %1708 }
0x1850   :  { %v1191_v54 = vadd.f32 1.0, %v1709_v40  ;;  %v1389_v40 = vld [vmem:[%s2380_s10 + $0x18] sm:$0xff] }
0x1851   :  { %1416 = vmatpush.msra.mxu2 %v1389_v40 }
0x1852   :  { %1710 = vrcp.f32 %v1191_v54  ;;  %v1203_v58 = vand.u32 2147483648, %v1191_v54  ;;  %vm1197_vm13 = vweird.f32 %v1191_v54  ;;  %v1201_v59 = vand.u32 2147483647, %v1191_v54 }
0x1854   :  { %v1204_v61 = vor.u32 1.1754944e-38, %v1203_v58  ;;  %vm1202_vm3 = vcmp.eq.f32.partialorder %v1201_v59, 8.507059e+37 }
0x1858   :  { %v1711_v55 = vpop.eup %1710 }
0x1859   :  { %v1193_v15 = vmul.f32 %v1711_v55, %v1191_v54  ;;  %vm1198_vm12 = vweird.f32 %v1711_v55  ;;  %v1387_v54 = vld [vmem:[%s2380_s10 + $0x8] sm:$0xff] }
0x185a   :  { %vm1199_vm14 = vmor %vm1197_vm13, %vm1198_vm12  ;;  %vm1484_vm12 = vcmask 523264   ;;  %vm1486_vm13 = vcmask 654336  }
0x185b   :  { %v1194_v48 = vsub.f32 1.0, %v1193_v15 }
0x185d   :  { %v1195_v43 = vmul.f32 %v1711_v55, %v1194_v48 }
0x185f   :  { %v1196_v56 = vadd.f32 %v1711_v55, %v1195_v43 }
0x1861   :  { %v1200_v60 = vsel %vm1199_vm14, %v1711_v55, %v1196_v56  ;;  %vm1488_vm14 = vcmask 785408  }
0x1862   :  { %v1205_v50 = vsel %vm1202_vm3, %v1204_v61, %v1200_v60 }
0x1863   :  { %v1211_v23 = vmul.f32 %v1209_v62, %v1205_v50 }
0x18c0   :  { %v1214_v49 = vpop.permute.xlu0 %1213 }
0x18c1   :  { %v1216_v51 = vmul.f32 %v1214_v49, %v1205_v50 }
0x18c3   :  { %1218 = vrot.lane.b32.xlu1 %v1216_v51, %s1900_s28 }
0x1935   :  { %v1219_v63 = vpop.permute.xlu1 %1218 }
0x1936   :  { %v1221_v0 = vadd.f32 %v1219_v63, %v1211_v23 }
0x1938   :  { %1712 = vtanh.f32 %v1221_v0  ;;  %v1279_v29 = vrot.slane %v1221_v0, 6 }
0x193e   :  { %v1713_v1 = vpop.eup %1712 }
0x193f   :  { %1224 = vrot.lane.b32.xlu2 %v1713_v1, %s1900_s28 }
0x1999   :  { %v1225_v2 = vpop.permute.xlu2 %1224 }
0x199a   :  { %v1227_v3 = vmul.f32 %v1225_v2, %v1205_v50 }
0x199c   :  { %v1229_v4 = vrot.slane %v1227_v3, 2  ;;  %v1383_v36 = vsel %vm760_vm15, %v2292_v41, %v1227_v3  ;;  %v1601_v3 = vld [vmem:[#allocation8] ss:$0 sm:$0xff] }
0x199e   :  { %1230 = vrot.lane.b32.xlu0 %v1229_v4, %s1901_s8 }
0x1a10   :  { %v1231_v5 = vpop.permute.xlu0 %1230 }
0x1a11   :  { %1574 = vmatmul.msk.f32.vlgmr.msrb.gmra.mxu0 %vm167_vm0, %v1231_v5 }
0x1a8e   :  { %v1251_v6 = vpop.f32.mrf.mxu0 }
0x1a8f   :  { %v1255_v7 = vrot.slane %v1251_v6, 4 }
0x1a91   :  { %v1257_v8 = vadd.f32 %v1255_v7, %v2286_v53 }
0x1a93   :  { %1714 = vtanh.f32 %v1257_v8  ;;  %v1575_v11 = vmul.f32 -1.442695, %v1257_v8 }
0x1a95   :  { %1716 = vpow2.f32 %v1575_v11 }
0x1a99   :  { %v1715_v10 = vpop.eup %1714 }
0x1a9a   :  { %1283 = vrot.lane.b32.xlu1 %v1715_v10, %s1900_s28 }
0x1a9b   :  { %v1717_v12 = vpop.eup %1716 }
0x1a9c   :  { %v1261_v14 = vadd.f32 1.0, %v1717_v12 }
0x1a9e   :  { %1718 = vrcp.f32 %v1261_v14  ;;  %v1273_v24 = vand.u32 2147483648, %v1261_v14  ;;  %vm1267_vm5 = vweird.f32 %v1261_v14  ;;  %v1271_v25 = vand.u32 2147483647, %v1261_v14 }
0x1aa0   :  { %v1274_v26 = vor.u32 1.1754944e-38, %v1273_v24  ;;  %vm1272_vm7 = vcmp.eq.f32.partialorder %v1271_v25, 8.507059e+37 }
0x1aa4   :  { %v1719_v17 = vpop.eup %1718 }
0x1aa5   :  { %v1263_v18 = vmul.f32 %v1719_v17, %v1261_v14  ;;  %vm1268_vm4 = vweird.f32 %v1719_v17 }
0x1aa6   :  { %vm1269_vm6 = vmor %vm1267_vm5, %vm1268_vm4 }
0x1aa7   :  { %v1264_v19 = vsub.f32 1.0, %v1263_v18 }
0x1aa9   :  { %v1265_v21 = vmul.f32 %v1719_v17, %v1264_v19 }
0x1aab   :  { %v1266_v22 = vadd.f32 %v1719_v17, %v1265_v21 }
0x1aad   :  { %v1270_v16 = vsel %vm1269_vm6, %v1719_v17, %v1266_v22 }
0x1aae   :  { %v1275_v13 = vsel %vm1272_vm7, %v1274_v26, %v1270_v16 }
0x1aaf   :  { %v1281_v20 = vmul.f32 %v1279_v29, %v1275_v13 }
0x1b0c   :  { %v1284_v27 = vpop.permute.xlu1 %1283 }
0x1b0d   :  { %v1286_v28 = vmul.f32 %v1284_v27, %v1275_v13 }
0x1b0f   :  { %1288 = vrot.lane.b32.xlu2 %v1286_v28, %s1900_s28 }
0x1b69   :  { %v1289_v30 = vpop.permute.xlu2 %1288 }
0x1b6a   :  { %v1291_v31 = vadd.f32 %v1289_v30, %v1281_v20 }
0x1b6c   :  { %1720 = vtanh.f32 %v1291_v31  ;;  %v1349_v23 = vrot.slane %v1291_v31, 6 }
0x1b72   :  { %v1721_v46 = vpop.eup %1720 }
0x1b73   :  { %1294 = vrot.lane.b32.xlu0 %v1721_v46, %s1900_s28 }
0x1be5   :  { %v1295_v32 = vpop.permute.xlu0 %1294 }
0x1be6   :  { %v1297_v33 = vmul.f32 %v1295_v32, %v1275_v13 }
0x1be8   :  { %v1299_v37 = vrot.slane %v1297_v33, 4  ;;  %v1384_v38 = vsel %vm762_vm2, %v1383_v36, %v1297_v33 }
0x1bea   :  { %1300 = vrot.lane.b32.xlu1 %v1299_v37, %s1901_s8 }
0x1c5c   :  { %v1301_v39 = vpop.permute.xlu1 %1300 }
0x1c5d   :  { %1576 = vmatmul.msk.f32.vlgmr.msra.gmra.mxu1 %vm167_vm0, %v1301_v39 }
0x1cda   :  { %v1321_v42 = vpop.f32.mrf.mxu1 }
0x1cdb   :  { %v1325_v44 = vrot.slane %v1321_v42, 2 }
0x1cdd   :  { %v1327_v35 = vadd.f32 %v1325_v44, %v2286_v53  ;;  %v1388_v53 = vld [vmem:[%s2380_s10 + $0x10] sm:$0xff] }
0x1cde   :  { %1417 = vmatpush.msra.mxu2 %v1388_v53 }
0x1cdf   :  { %1722 = vtanh.f32 %v1327_v35  ;;  %v1577_v41 = vmul.f32 -1.442695, %v1327_v35 }
0x1ce0   :  { %1418 = vmatpush.msra.mxu2 %v1387_v54 }
0x1ce1   :  { %1724 = vpow2.f32 %v1577_v41 }
0x1ce5   :  { %v1723_v57 = vpop.eup %1722 }
0x1ce6   :  { %1353 = vrot.lane.b32.xlu2 %v1723_v57, %s1900_s28 }
0x1ce7   :  { %v1725_v45 = vpop.eup %1724 }
0x1ce8   :  { %v1331_v47 = vadd.f32 1.0, %v1725_v45 }
0x1cea   :  { %1726 = vrcp.f32 %v1331_v47  ;;  %v1343_v58 = vand.u32 2147483648, %v1331_v47  ;;  %vm1337_vm2 = vweird.f32 %v1331_v47  ;;  %v1341_v59 = vand.u32 2147483647, %v1331_v47 }
0x1cec   :  { %v1344_v61 = vor.u32 1.1754944e-38, %v1343_v58  ;;  %vm1342_vm10 = vcmp.eq.f32.partialorder %v1341_v59, 8.507059e+37 }
0x1cee   :  { %1396 = vrot.lane.b32.xlu2 %v2280_v9, %s1901_s8  ;;  %v1386_v9 = vld [vmem:[%s2380_s10] sm:$0xff]  ;;  %s1902_s10 = smov 48  }
0x1cef   :  { %1419 = vmatpush.msra.mxu2 %v1386_v9 }
0x1cf0   :  { %v1727_v55 = vpop.eup %1726 }
0x1cf1   :  { %v1333_v15 = vmul.f32 %v1727_v55, %v1331_v47  ;;  %vm1338_vm15 = vweird.f32 %v1727_v55 }
0x1cf2   :  { %vm1339_vm9 = vmor %vm1337_vm2, %vm1338_vm15 }
0x1cf3   :  { %v1334_v48 = vsub.f32 1.0, %v1333_v15 }
0x1cf5   :  { %v1335_v43 = vmul.f32 %v1727_v55, %v1334_v48 }
0x1cf7   :  { %v1336_v56 = vadd.f32 %v1727_v55, %v1335_v43 }
0x1cf9   :  { %v1340_v60 = vsel %vm1339_vm9, %v1727_v55, %v1336_v56 }
0x1cfa   :  { %v1345_v50 = vsel %vm1342_vm10, %v1344_v61, %v1340_v60 }
0x1cfb   :  { %v1351_v63 = vmul.f32 %v1349_v23, %v1345_v50 }
0x1d40   :  { %v1354_v49 = vpop.permute.xlu2 %1353 }
0x1d41   :  { %v1356_v51 = vmul.f32 %v1354_v49, %v1345_v50 }
0x1d43   :  { %1358 = vrot.lane.b32.xlu0 %v1356_v51, %s1900_s28 }
0x1d48   :  { %v1397_v62 = vpop.permute.xlu2 %1396 }
0x1d49   :  { %1578 = vmatmul.msk.f32.vlgmr.msra.gmra.mxu2 %vm167_vm0, %v1397_v62 }
0x1db5   :  { %v1359_v0 = vpop.permute.xlu0 %1358 }
0x1db6   :  { %v2330_v1 = vadd.f32 %v1359_v0, %v1351_v63 }
0x1db8   :  { %1728 = vtanh.f32 %v2330_v1 }
0x1dbe   :  { %v1729_v2 = vpop.eup %1728 }
0x1dbf   :  { %1364 = vrot.lane.b32.xlu1 %v1729_v2, %s1900_s28 }
0x1dcc   :  { %v1421_v4 = vpop.f32.mrf.mxu2 }
0x1dcd   :  { %v1422_v5 = vadd.f32 %v1601_v3, %v1421_v4 }
0x1dcf   :  { %v1427_v6 = vsel %vm125_vm1, %v1422_v5, -inf }
0x1de9   :  { %1428 = vmax.xlane.f32.xlu1 %v1427_v6 }
0x1e31   :  { %v1365_v7 = vpop.permute.xlu1 %1364 }
0x1e32   :  { %v1367_v8 = vmul.f32 %v1365_v7, %v1345_v50 }
0x1e34   :  { %v1385_v10 = vsel %vm764_vm8, %v1384_v38, %v1367_v8  ;;  %vm753_vm8 = vcmask 261126  }
0x1e35   :  { %1398 = vrot.lane.b32.xlu0 %v1385_v10, %s1901_s8 }
0x1e5c   :  { %v1429_v11 = vpop.xlane.xlu1 %1428 }
0x1e5d   :  { %v1433_v12 = vsub.f32 %v1422_v5, %v1429_v11 }
0x1e5f   :  { %v1435_v14 = vmul.f32 1.442695, %v1433_v12 }
0x1e61   :  { %1730 = vpow2.f32 %v1435_v14 }
0x1e67   :  { %v1731_v17 = vpop.eup %1730 }
0x1e68   :  { %v1439_v18 = vsel %vm125_vm1, %v1731_v17, 0.0 }
0x1e69   :  { %1440 = vadd.xlane.f32.xlu0 %v1439_v18 }
0x1ea7   :  { %v1399_v19 = vpop.permute.xlu0 %1398 }
0x1ea8   :  { %1579 = vmatmul.msk.f32.gmra.mxu2 %vm167_vm0, %v1399_v19 }
0x1edc   :  { %v1441_v21 = vpop.xlane.xlu0 %1440 }
0x1edd   :  { %1732 = vlog2.f32 %v1441_v21 }
0x1ee3   :  { %v1733_v22 = vpop.eup %1732 }
0x1ee4   :  { %v1446_v24 = vmul.f32 0.6931472, %v1733_v22 }
0x1ee6   :  { %v1449_v25 = vsub.f32 %v1433_v12, %v1446_v24 }
0x1ee8   :  { %v1460_v16 = vrot.slane %v1449_v25, 6  ;;  %v1452_v26 = vrot.slane %v1449_v25, 2  ;;  %v1456_v36 = vrot.slane %v1449_v25, 4 }
0x1eea   :  { %1461 = vrot.lane.b32.xlu0 %v1460_v16, %s1902_s10  ;;  %1453 = vrot.lane.b32.xlu1 %v1452_v26, %s1903_s29 }
0x1ef2   :  { %756 = vrot.lane.b32.xlu0 %v2266_v52, %s1904_s30  ;;  %750 = vrot.lane.b32.xlu1 %v2272_v34, %s1901_s8 }
0x1f2b   :  { %v1424_v27 = vpop.f32.mrf.mxu2 }
0x1f2c   :  { %v1425_v13 = vadd.f32 %v1601_v3, %v1424_v27 }
0x1f2e   :  { %v1430_v28 = vsel %vm125_vm1, %v1425_v13, -inf }
0x1f2f   :  { %1431 = vmax.xlane.f32.xlu2 %v1430_v28 }
0x1f5c   :  { %v1462_v29 = vpop.permute.xlu0 %1461  ;;  %v1454_v20 = vpop.permute.xlu1 %1453 }
0x1f5d   :  { %v1480_v40 = vsel %vm125_vm1, %v1449_v25, %v1454_v20 }
0x1f64   :  { %v757_v30 = vpop.permute.xlu0 %756  ;;  %v751_v31 = vpop.permute.xlu1 %750 }
0x1f65   :  { %759 = vst.msk [vmem:[#allocation11 - $0x6] sm:$0xc0] %vm753_vm8, %v757_v30 }
0x1f66   :  { %754 = vst.msk [vmem:[#allocation10 - $0x6] sm:$0xc0] %vm753_vm8, %v751_v31 }
0x1fa2   :  { %v1432_v46 = vpop.xlane.xlu2 %1431 }
0x1fa3   :  { %v1434_v32 = vsub.f32 %v1425_v13, %v1432_v46 }
0x1fa5   :  { %v1437_v52 = vmul.f32 1.442695, %v1434_v32 }
0x1fa7   :  { %1734 = vpow2.f32 %v1437_v52 }
0x1fad   :  { %v1735_v33 = vpop.eup %1734 }
0x1fae   :  { %v1442_v34 = vsel %vm125_vm1, %v1735_v33, 0.0  ;;  %vm1490_vm1 = vcmask 916480  }
0x1faf   :  { %1443 = vadd.xlane.f32.xlu2 %v1442_v34 }
0x1fc7   :  { %1457 = vrot.lane.b32.xlu2 %v1456_v36, %s1900_s28 }
0x2022   :  { %v1444_v37 = vpop.xlane.xlu2 %1443 }
0x2023   :  { %1736 = vlog2.f32 %v1444_v37 }
0x2029   :  { %v1737_v38 = vpop.eup %1736 }
0x202a   :  { %v1448_v39 = vmul.f32 0.6931472, %v1737_v38  ;;  %v1458_v41 = vpop.permute.xlu2 %1457 }
0x202b   :  { %v1481_v53 = vsel %vm167_vm0, %v1480_v40, %v1458_v41 }
0x202c   :  { %v1450_v42 = vsub.f32 %v1434_v32, %v1448_v39  ;;  %v1483_v55 = vsel %vm1482_vm11, %v1481_v53, %v1462_v29 }
0x202e   :  { %1465 = vrot.lane.b32.xlu1 %v1450_v42, %s1901_s8  ;;  %v1468_v44 = vrot.slane %v1450_v42, 2  ;;  %v1472_v35 = vrot.slane %v1450_v42, 4  ;;  %v1476_v57 = vrot.slane %v1450_v42, 6 }
0x2030   :  { %1469 = vrot.lane.b32.xlu0 %v1468_v44, %s1905_s16  ;;  %1473 = vrot.lane.b32.xlu2 %v1472_v35, %s1904_s30 }
0x2036   :  { %1375 = vrot.lane.b32.xlu1 %v2330_v1, %s1904_s30 }
0x2038   :  { %1477 = vrot.lane.b32.xlu0 %v1476_v57, %s1906_s0  ;;  %1369 = vrot.lane.b32.xlu2 %v1367_v8, %s1901_s8  ;;  %s1512_s8 = sshll.u32 %s1909_s13, 4  ;;  %s1513_s8 = int_to_ptr.vmem [resolvable:$true] %s1512_s8 }
0x208a   :  { %v1474_v45 = vpop.permute.xlu2 %1473 }
0x2092   :  { %v1370_v47 = vpop.permute.xlu2 %1369 }
0x2093   :  { %1373 = vst.msk [vmem:[#allocation10 - $0x4] sm:$0xc0] %vm753_vm8, %v1370_v47 }
0x2094   :  { %1507 = dma.vmem_to_hbm [thread:$0]  %s1500_s15, 64, %s1502_s11, [#allocation4], %s1900_s28, %s1900_s28, %s1908_s18  }
0x20a0   :  { %v1466_v54 = vpop.permute.xlu1 %1465 }
0x20a1   :  { %v1485_v15 = vsel %vm1484_vm12, %v1483_v55, %v1466_v54 }
0x20a2   :  { %v1470_v9 = vpop.permute.xlu0 %1469 }
0x20a3   :  { %v1487_v48 = vsel %vm1486_vm13, %v1485_v15, %v1470_v9 }
0x20a4   :  { %v1489_v58 = vsel %vm1488_vm14, %v1487_v48, %v1474_v45 }
0x20a8   :  { %v1376_v43 = vpop.permute.xlu1 %1375 }
0x20a9   :  { %1379 = vst.msk [vmem:[#allocation11 - $0x4] sm:$0xc0] %vm753_vm8, %v1376_v43 }
0x20aa   :  { %v1478_v56 = vpop.permute.xlu0 %1477  ;;  %1520 = dma.vmem_to_hbm [thread:$0]  %s1513_s8, 64, %s1515_s20, [#allocation12], %s1900_s28, %s1900_s28, %s1908_s18  }
0x20ab   :  { %v1491_v59 = vsel %vm1490_vm1, %v1489_v58, %v1478_v56 }
0x20ac   :  { %1492 = vst [vmem:[%s2382_s12] sm:$0x3] %v1491_v59 }
0x20ad   :  { %1888 = dma.done.wait [#allocation4], 64  }
0x20ae   :  { %1889 = vsyncadd [#allocation4], 4294967232 }
0x20af   :  { %1890 = dma.done.wait [#allocation12], 64  }
0x20b0   :  { %1891 = vsyncadd [#allocation12], 4294967232 }
0x20b1   :  { %1531 = vsyncpa [#allocation3], 1 }
0x20b2   :  { %1532 = vsyncpa [#allocation6], 1 }
0x20b3   :  { %1533 = vsyncpa [#allocation9], 1 }
0x20b4   :  { %1534 = vsyncpa [#allocation4], 1 }
0x20b5   :  { %1535 = vsyncpa [#allocation12], 1 }

</bundles_post_ra>
